<compile_context>
chip_gen: v6e
topology: v6e:2x2x1
jax: 0.10.0
libtpu: 0.0.40
codegen_flags: <defaults>
</compile_context>

<pallas_src>
import jax
import jax.numpy as jnp
import numpy as np
from jax.experimental import pallas as pl
from jax.experimental.pallas import tpu as pltpu


def lstm_fc_kernel(x_ref, wih_ref, whh_ref, b_ref, wfc_ref, bfc_ref, out_ref, gx_sc):
    # x_ref: (T*Bp, I) time-major;  gx_sc: (T, Bp, 4Hp) scratch.
    T, Bp, G = gx_sc.shape
    Hp = G // 4

    # ---- Phase 1 (one-time): hoisted input projection + fused bias for ALL timesteps.
    # One MXU matmul, one full-tile store (x is already time-major from the wrapper).
    gx = jnp.dot(x_ref[...], wih_ref[...],
                 preferred_element_type=jnp.float32) + b_ref[...]        # (T*Bp, 4Hp)
    gx_sc[...] = gx.reshape(T, Bp, G)

    def sigmoid(z):      # 1 EUP push (tanh) instead of 2 (exp + reciprocal)
        return 0.5 * (jnp.tanh(0.5 * z) + 1.0)

    # ---- Phase 2: serial LSTM recurrence, fully inside the kernel.
    def step(t, carry):
        h, c = carry
        gates = gx_sc[t] + jnp.dot(h, whh_ref[...],
                                   preferred_element_type=jnp.float32)   # (Bp, 4Hp)
        # Gate layout is (i, f, o, g): one contiguous sigmoid slab + one tanh block.
        sfo = sigmoid(gates[:, :3 * Hp])
        i_g = sfo[:, 0 * Hp:1 * Hp]
        f_g = sfo[:, 1 * Hp:2 * Hp]
        o_g = sfo[:, 2 * Hp:3 * Hp]
        g_g = jnp.tanh(gates[:, 3 * Hp:])
        c = f_g * c + i_g * g_g
        h = o_g * jnp.tanh(c)
        return h, c

    h0 = jnp.zeros((Bp, Hp), jnp.float32)
    c0 = jnp.zeros((Bp, Hp), jnp.float32)
    # T is static and small -> full unroll gives the LLO scheduler cross-step visibility.
    h_last, _ = jax.lax.fori_loop(0, T, step, (h0, c0), unroll=True)

    # ---- Phase 3 (one-time): fused Linear on the last hidden state, lane-dense output.
    out_ref[...] = (jnp.dot(h_last, wfc_ref[...], preferred_element_type=jnp.float32)
                    + bfc_ref[...])


def _round_up(v, m):
    return (v + m - 1) // m * m


# torch gate order along the 4H axis is (i, f, g, o); kernel layout is (i, f, o, g)
# so the three sigmoid gates are contiguous.
_GATE_SLOT = (0, 1, 3, 2)


def _pad_gate_cols(w, H, Hp):
    """(..., 4H) torch-order -> (..., 4Hp) kernel-order, each gate at a 128-aligned slot."""
    out = jnp.zeros(w.shape[:-1] + (4 * Hp,), w.dtype)
    for k, slot in enumerate(_GATE_SLOT):
        out = out.at[..., slot * Hp:slot * Hp + H].set(w[..., k * H:(k + 1) * H])
    return out


def prepare_kernel_params(raw_params, Hp, Op):
    """Transpose to right-multiply form, zero-pad H->Hp / O->Op, reorder gates.

    Exact: padded hidden units get zero pre-activations -> c stays 0, h stays 0, and the
    padded rows of W_hh^T / W_fc^T are zero so they never contaminate real units.
    """
    w_ih, w_hh, b_ih, b_hh, w_fc, b_fc = raw_params
    H = w_hh.shape[1]
    O = w_fc.shape[0]
    wih_t = _pad_gate_cols(w_ih.T, H, Hp)                                   # (I, 4Hp)
    whh_t = jnp.zeros((Hp, 4 * Hp), jnp.float32).at[:H].set(
        _pad_gate_cols(w_hh.T, H, Hp))                                      # (Hp, 4Hp)
    b = _pad_gate_cols((b_ih + b_hh)[None, :], H, Hp)                       # (1, 4Hp)
    wfc_t = jnp.zeros((Hp, Op), jnp.float32).at[:H, :O].set(w_fc.T)         # (Hp, Op)
    bfc = jnp.zeros((1, Op), jnp.float32).at[0, :O].set(b_fc)               # (1, Op)
    return wih_t, whh_t, b, wfc_t, bfc


def music_generator_forward(x, raw_params):
    """x: (B, T, I) float32. Returns (B, O) float32 == fc(lstm(x)[:, -1, :])."""
    B, T, I = x.shape
    H = raw_params[1].shape[1]
    O = raw_params[4].shape[0]
    Hp = _round_up(H, 128)
    Op = _round_up(O, 128)
    Bp = _round_up(B, 8)

    wih_t, whh_t, b, wfc_t, bfc = prepare_kernel_params(raw_params, Hp, Op)

    # Wrapper-side layout plumbing (free XLA ops on a tiny HBM array): pad batch to the
    # 8-sublane multiple, go time-major, flatten -> kernel Phase 1 is one lane-dense
    # matmul and the per-batch reorder loop disappears.  Zero padded-batch rows never
    # interact with real rows (no cross-batch coupling in an LSTM) and are sliced away.
    x_p = jnp.zeros((Bp, T, I), jnp.float32).at[:B].set(x)
    x_tm = jnp.transpose(x_p, (1, 0, 2)).reshape(T * Bp, I)

    out_padded = pl.pallas_call(
        lstm_fc_kernel,
        out_shape=jax.ShapeDtypeStruct((Bp, Op), jnp.float32),
        grid_spec=pltpu.PrefetchScalarGridSpec(
            num_scalar_prefetch=0,
            grid=(1,),                                              # single invocation
            in_specs=[
                pl.BlockSpec((T * Bp, I), lambda i: (0, 0)),        # x, time-major rows
                pl.BlockSpec((I, 4 * Hp), lambda i: (0, 0)),        # W_ih^T (gate-padded)
                pl.BlockSpec((Hp, 4 * Hp), lambda i: (0, 0)),       # W_hh^T (gate-padded)
                pl.BlockSpec((1, 4 * Hp), lambda i: (0, 0)),        # b_ih + b_hh
                pl.BlockSpec((Hp, Op), lambda i: (0, 0)),           # W_fc^T
                pl.BlockSpec((1, Op), lambda i: (0, 0)),            # b_fc
            ],
            out_specs=pl.BlockSpec((Bp, Op), lambda i: (0, 0)),     # lane-dense, unmasked
            scratch_shapes=[
                pltpu.VMEM((T, Bp, 4 * Hp), jnp.float32),           # precomputed input gates
            ],
        ),
        compiler_params=pltpu.CompilerParams(
            dimension_semantics=("arbitrary",),
            vmem_limit_bytes=32 * 1024 * 1024,
        ),
    )(x_tm, wih_t, whh_t, b, wfc_t, bfc)

    return out_padded[:B, :O]


def reference_forward(x, raw_params):
    """Pure-JAX reference mirroring torch.nn.LSTM(batch_first=True) + Linear."""
    w_ih, w_hh, b_ih, b_hh, w_fc, b_fc = raw_params
    B, T, I = x.shape
    H = w_hh.shape[1]

    def step(carry, xt):
        h, c = carry
        gates = xt @ w_ih.T + h @ w_hh.T + b_ih + b_hh
        i_g = jax.nn.sigmoid(gates[:, 0 * H:1 * H])
        f_g = jax.nn.sigmoid(gates[:, 1 * H:2 * H])
        g_g = jnp.tanh(gates[:, 2 * H:3 * H])
        o_g = jax.nn.sigmoid(gates[:, 3 * H:4 * H])
        c = f_g * c + i_g * g_g
        h = o_g * jnp.tanh(c)
        return (h, c), None

    h0 = jnp.zeros((B, H), jnp.float32)
    c0 = jnp.zeros((B, H), jnp.float32)
    (h_last, _), _ = jax.lax.scan(step, (h0, c0), jnp.transpose(x, (1, 0, 2)))
    return h_last @ w_fc.T + b_fc


def init_raw_params(key, input_size, hidden_size, output_size):
    """PyTorch-shaped params: W_ih(4H,I), W_hh(4H,H), b_ih(4H), b_hh(4H), W_fc(O,H), b_fc(O)."""
    k = jax.random.split(key, 6)
    bound = 1.0 / np.sqrt(hidden_size)
    w_ih = jax.random.uniform(k[0], (4 * hidden_size, input_size), jnp.float32, -bound, bound)
    w_hh = jax.random.uniform(k[1], (4 * hidden_size, hidden_size), jnp.float32, -bound, bound)
    b_ih = jax.random.uniform(k[2], (4 * hidden_size,), jnp.float32, -bound, bound)
    b_hh = jax.random.uniform(k[3], (4 * hidden_size,), jnp.float32, -bound, bound)
    w_fc = jax.random.uniform(k[4], (output_size, hidden_size), jnp.float32, -bound, bound)
    b_fc = jax.random.uniform(k[5], (output_size,), jnp.float32, -bound, bound)
    return (w_ih, w_hh, b_ih, b_hh, w_fc, b_fc)


if __name__ == "__main__":
    B, T, I, H, O = 2, 8, 4, 32, 16

    key = jax.random.PRNGKey(0)
    kx, kp = jax.random.split(key)
    x = jax.random.normal(kx, (B, T, I), jnp.float32)
    raw_params = init_raw_params(kp, I, H, O)

    out = music_generator_forward(x, raw_params)
    out = jax.block_until_ready(out)

    ref = reference_forward(x, raw_params)
    np.testing.assert_allclose(np.asarray(out), np.asarray(ref), rtol=1e-5, atol=1e-5)

    print("KERNEL_OK")
</pallas_src>

<mosaic_0001>
module attributes {stable_mosaic.version = 11 : i64} {
  func.func @lstm_fc_kernel(%arg0: i32, %arg1: memref<64x4xf32, #tpu.memory_space<vmem>>, %arg2: memref<4x512xf32, #tpu.memory_space<vmem>>, %arg3: memref<128x512xf32, #tpu.memory_space<vmem>>, %arg4: memref<1x512xf32, #tpu.memory_space<vmem>>, %arg5: memref<128x128xf32, #tpu.memory_space<vmem>>, %arg6: memref<1x128xf32, #tpu.memory_space<vmem>>, %arg7: memref<8x128xf32, #tpu.memory_space<vmem>>, %arg8: memref<8x8x512xf32, #tpu.memory_space<vmem>>) attributes {dimension_semantics = [#tpu.dimension_semantics<arbitrary>], iteration_bounds = array<i64: 1>, scalar_prefetch = 0 : i64, scratch_operands = 1 : i64, tpu.core_type = #tpu.core_type<tc>, window_params = [{pipeline_mode = #tpu.pipeline_mode<synchronous>, transform_indices = @transform_0, window_bounds = array<i64: 64, 4>}, {pipeline_mode = #tpu.pipeline_mode<synchronous>, transform_indices = @transform_1, window_bounds = array<i64: 4, 512>}, {pipeline_mode = #tpu.pipeline_mode<synchronous>, transform_indices = @transform_2, window_bounds = array<i64: 128, 512>}, {pipeline_mode = #tpu.pipeline_mode<synchronous>, transform_indices = @transform_3, window_bounds = array<i64: 1, 512>}, {pipeline_mode = #tpu.pipeline_mode<synchronous>, transform_indices = @transform_4, window_bounds = array<i64: 128, 128>}, {pipeline_mode = #tpu.pipeline_mode<synchronous>, transform_indices = @transform_5, window_bounds = array<i64: 1, 128>}, {pipeline_mode = #tpu.pipeline_mode<synchronous>, transform_indices = @transform_6, window_bounds = array<i64: 8, 128>}]} {
    %c0 = arith.constant 0 : index
    %c0_0 = arith.constant 0 : index
    %0 = vector.load %arg1[%c0, %c0_0] : memref<64x4xf32, #tpu.memory_space<vmem>>, vector<64x4xf32>
    %c0_1 = arith.constant 0 : index
    %c0_2 = arith.constant 0 : index
    %1 = vector.load %arg2[%c0_1, %c0_2] : memref<4x512xf32, #tpu.memory_space<vmem>>, vector<4x512xf32>
    %cst = arith.constant dense<0.000000e+00> : vector<64x512xf32>
    %2 = tpu.matmul %0, %1, %cst {dimension_numbers = #tpu.dot_dimension_numbers<[1], [0], [0], [1], [0, 0, 1, 1], [], []>} : vector<64x4xf32>, vector<4x512xf32>, vector<64x512xf32> -> vector<64x512xf32>
    %c0_3 = arith.constant 0 : index
    %c0_4 = arith.constant 0 : index
    %3 = vector.load %arg4[%c0_3, %c0_4] : memref<1x512xf32, #tpu.memory_space<vmem>>, vector<1x512xf32>
    %4 = vector.broadcast %3 : vector<1x512xf32> to vector<64x512xf32>
    %5 = arith.addf %2, %4 : vector<64x512xf32>
    %6 = vector.shape_cast %5 : vector<64x512xf32> to vector<8x8x512xf32>
    %c0_5 = arith.constant 0 : index
    %c0_6 = arith.constant 0 : index
    %c0_7 = arith.constant 0 : index
    %7 = vector.load %arg8[%c0_5, %c0_6, %c0_7] : memref<8x8x512xf32, #tpu.memory_space<vmem>>, vector<8x8x512xf32>
    tpu.vector_store %arg8[%c0_5, %c0_6, %c0_7], %6 {strides = array<i32>} : memref<8x8x512xf32, #tpu.memory_space<vmem>>, vector<8x8x512xf32>,
    %cst_8 = arith.constant 0.000000e+00 : f32
    %8 = vector.broadcast %cst_8 : f32 to vector<8x128xf32>
    %cst_9 = arith.constant 0.000000e+00 : f32
    %9 = vector.broadcast %cst_9 : f32 to vector<8x128xf32>
    %c0_i32 = arith.constant 0 : i32
    %10 = arith.index_cast %c0_i32 : i32 to index
    %c0_10 = arith.constant 0 : index
    %c0_11 = arith.constant 0 : index
    %11 = vector.load %arg8[%10, %c0_10, %c0_11] : memref<8x8x512xf32, #tpu.memory_space<vmem>>, vector<1x8x512xf32>
    %12 = vector.shape_cast %11 : vector<1x8x512xf32> to vector<8x512xf32>
    %c0_12 = arith.constant 0 : index
    %c0_13 = arith.constant 0 : index
    %13 = vector.load %arg3[%c0_12, %c0_13] : memref<128x512xf32, #tpu.memory_space<vmem>>, vector<128x512xf32>
    %cst_14 = arith.constant dense<0.000000e+00> : vector<8x512xf32>
    %14 = tpu.matmul %8, %13, %cst_14 {dimension_numbers = #tpu.dot_dimension_numbers<[1], [0], [0], [1], [0, 0, 1, 1], [], []>} : vector<8x128xf32>, vector<128x512xf32>, vector<8x512xf32> -> vector<8x512xf32>
    %15 = arith.addf %12, %14 : vector<8x512xf32>
    %16 = vector.extract_strided_slice %15 {offsets = [0, 0], sizes = [8, 384], strides = [1, 1]} : vector<8x512xf32> to vector<8x384xf32>
    %cst_15 = arith.constant 5.000000e-01 : f32
    %17 = vector.broadcast %cst_15 : f32 to vector<8x384xf32>
    %18 = arith.mulf %17, %16 : vector<8x384xf32>
    %19 = math.tanh %18 : vector<8x384xf32>
    %cst_16 = arith.constant 1.000000e+00 : f32
    %20 = vector.broadcast %cst_16 : f32 to vector<8x384xf32>
    %21 = arith.addf %19, %20 : vector<8x384xf32>
    %cst_17 = arith.constant 5.000000e-01 : f32
    %22 = vector.broadcast %cst_17 : f32 to vector<8x384xf32>
    %23 = arith.mulf %22, %21 : vector<8x384xf32>
    %24 = vector.extract_strided_slice %23 {offsets = [0, 0], sizes = [8, 128], strides = [1, 1]} : vector<8x384xf32> to vector<8x128xf32>
    %25 = vector.extract_strided_slice %23 {offsets = [0, 128], sizes = [8, 128], strides = [1, 1]} : vector<8x384xf32> to vector<8x128xf32>
    %26 = vector.extract_strided_slice %23 {offsets = [0, 256], sizes = [8, 128], strides = [1, 1]} : vector<8x384xf32> to vector<8x128xf32>
    %27 = vector.extract_strided_slice %15 {offsets = [0, 384], sizes = [8, 128], strides = [1, 1]} : vector<8x512xf32> to vector<8x128xf32>
    %28 = math.tanh %27 : vector<8x128xf32>
    %29 = arith.mulf %25, %9 : vector<8x128xf32>
    %30 = arith.mulf %24, %28 : vector<8x128xf32>
    %31 = arith.addf %29, %30 : vector<8x128xf32>
    %32 = math.tanh %31 : vector<8x128xf32>
    %33 = arith.mulf %26, %32 : vector<8x128xf32>
    %c1_i32 = arith.constant 1 : i32
    %34 = arith.index_cast %c1_i32 : i32 to index
    %c0_18 = arith.constant 0 : index
    %c0_19 = arith.constant 0 : index
    %35 = vector.load %arg8[%34, %c0_18, %c0_19] : memref<8x8x512xf32, #tpu.memory_space<vmem>>, vector<1x8x512xf32>
    %36 = vector.shape_cast %35 : vector<1x8x512xf32> to vector<8x512xf32>
    %c0_20 = arith.constant 0 : index
    %c0_21 = arith.constant 0 : index
    %37 = vector.load %arg3[%c0_20, %c0_21] : memref<128x512xf32, #tpu.memory_space<vmem>>, vector<128x512xf32>
    %cst_22 = arith.constant dense<0.000000e+00> : vector<8x512xf32>
    %38 = tpu.matmul %33, %37, %cst_22 {dimension_numbers = #tpu.dot_dimension_numbers<[1], [0], [0], [1], [0, 0, 1, 1], [], []>} : vector<8x128xf32>, vector<128x512xf32>, vector<8x512xf32> -> vector<8x512xf32>
    %39 = arith.addf %36, %38 : vector<8x512xf32>
    %40 = vector.extract_strided_slice %39 {offsets = [0, 0], sizes = [8, 384], strides = [1, 1]} : vector<8x512xf32> to vector<8x384xf32>
    %cst_23 = arith.constant 5.000000e-01 : f32
    %41 = vector.broadcast %cst_23 : f32 to vector<8x384xf32>
    %42 = arith.mulf %41, %40 : vector<8x384xf32>
    %43 = math.tanh %42 : vector<8x384xf32>
    %cst_24 = arith.constant 1.000000e+00 : f32
    %44 = vector.broadcast %cst_24 : f32 to vector<8x384xf32>
    %45 = arith.addf %43, %44 : vector<8x384xf32>
    %cst_25 = arith.constant 5.000000e-01 : f32
    %46 = vector.broadcast %cst_25 : f32 to vector<8x384xf32>
    %47 = arith.mulf %46, %45 : vector<8x384xf32>
    %48 = vector.extract_strided_slice %47 {offsets = [0, 0], sizes = [8, 128], strides = [1, 1]} : vector<8x384xf32> to vector<8x128xf32>
    %49 = vector.extract_strided_slice %47 {offsets = [0, 128], sizes = [8, 128], strides = [1, 1]} : vector<8x384xf32> to vector<8x128xf32>
    %50 = vector.extract_strided_slice %47 {offsets = [0, 256], sizes = [8, 128], strides = [1, 1]} : vector<8x384xf32> to vector<8x128xf32>
    %51 = vector.extract_strided_slice %39 {offsets = [0, 384], sizes = [8, 128], strides = [1, 1]} : vector<8x512xf32> to vector<8x128xf32>
    %52 = math.tanh %51 : vector<8x128xf32>
    %53 = arith.mulf %49, %31 : vector<8x128xf32>
    %54 = arith.mulf %48, %52 : vector<8x128xf32>
    %55 = arith.addf %53, %54 : vector<8x128xf32>
    %56 = math.tanh %55 : vector<8x128xf32>
    %57 = arith.mulf %50, %56 : vector<8x128xf32>
    %c2_i32 = arith.constant 2 : i32
    %58 = arith.index_cast %c2_i32 : i32 to index
    %c0_26 = arith.constant 0 : index
    %c0_27 = arith.constant 0 : index
    %59 = vector.load %arg8[%58, %c0_26, %c0_27] : memref<8x8x512xf32, #tpu.memory_space<vmem>>, vector<1x8x512xf32>
    %60 = vector.shape_cast %59 : vector<1x8x512xf32> to vector<8x512xf32>
    %c0_28 = arith.constant 0 : index
    %c0_29 = arith.constant 0 : index
    %61 = vector.load %arg3[%c0_28, %c0_29] : memref<128x512xf32, #tpu.memory_space<vmem>>, vector<128x512xf32>
    %cst_30 = arith.constant dense<0.000000e+00> : vector<8x512xf32>
    %62 = tpu.matmul %57, %61, %cst_30 {dimension_numbers = #tpu.dot_dimension_numbers<[1], [0], [0], [1], [0, 0, 1, 1], [], []>} : vector<8x128xf32>, vector<128x512xf32>, vector<8x512xf32> -> vector<8x512xf32>
    %63 = arith.addf %60, %62 : vector<8x512xf32>
    %64 = vector.extract_strided_slice %63 {offsets = [0, 0], sizes = [8, 384], strides = [1, 1]} : vector<8x512xf32> to vector<8x384xf32>
    %cst_31 = arith.constant 5.000000e-01 : f32
    %65 = vector.broadcast %cst_31 : f32 to vector<8x384xf32>
    %66 = arith.mulf %65, %64 : vector<8x384xf32>
    %67 = math.tanh %66 : vector<8x384xf32>
    %cst_32 = arith.constant 1.000000e+00 : f32
    %68 = vector.broadcast %cst_32 : f32 to vector<8x384xf32>
    %69 = arith.addf %67, %68 : vector<8x384xf32>
    %cst_33 = arith.constant 5.000000e-01 : f32
    %70 = vector.broadcast %cst_33 : f32 to vector<8x384xf32>
    %71 = arith.mulf %70, %69 : vector<8x384xf32>
    %72 = vector.extract_strided_slice %71 {offsets = [0, 0], sizes = [8, 128], strides = [1, 1]} : vector<8x384xf32> to vector<8x128xf32>
    %73 = vector.extract_strided_slice %71 {offsets = [0, 128], sizes = [8, 128], strides = [1, 1]} : vector<8x384xf32> to vector<8x128xf32>
    %74 = vector.extract_strided_slice %71 {offsets = [0, 256], sizes = [8, 128], strides = [1, 1]} : vector<8x384xf32> to vector<8x128xf32>
    %75 = vector.extract_strided_slice %63 {offsets = [0, 384], sizes = [8, 128], strides = [1, 1]} : vector<8x512xf32> to vector<8x128xf32>
    %76 = math.tanh %75 : vector<8x128xf32>
    %77 = arith.mulf %73, %55 : vector<8x128xf32>
    %78 = arith.mulf %72, %76 : vector<8x128xf32>
    %79 = arith.addf %77, %78 : vector<8x128xf32>
    %80 = math.tanh %79 : vector<8x128xf32>
    %81 = arith.mulf %74, %80 : vector<8x128xf32>
    %c3_i32 = arith.constant 3 : i32
    %82 = arith.index_cast %c3_i32 : i32 to index
    %c0_34 = arith.constant 0 : index
    %c0_35 = arith.constant 0 : index
    %83 = vector.load %arg8[%82, %c0_34, %c0_35] : memref<8x8x512xf32, #tpu.memory_space<vmem>>, vector<1x8x512xf32>
    %84 = vector.shape_cast %83 : vector<1x8x512xf32> to vector<8x512xf32>
    %c0_36 = arith.constant 0 : index
    %c0_37 = arith.constant 0 : index
    %85 = vector.load %arg3[%c0_36, %c0_37] : memref<128x512xf32, #tpu.memory_space<vmem>>, vector<128x512xf32>
    %cst_38 = arith.constant dense<0.000000e+00> : vector<8x512xf32>
    %86 = tpu.matmul %81, %85, %cst_38 {dimension_numbers = #tpu.dot_dimension_numbers<[1], [0], [0], [1], [0, 0, 1, 1], [], []>} : vector<8x128xf32>, vector<128x512xf32>, vector<8x512xf32> -> vector<8x512xf32>
    %87 = arith.addf %84, %86 : vector<8x512xf32>
    %88 = vector.extract_strided_slice %87 {offsets = [0, 0], sizes = [8, 384], strides = [1, 1]} : vector<8x512xf32> to vector<8x384xf32>
    %cst_39 = arith.constant 5.000000e-01 : f32
    %89 = vector.broadcast %cst_39 : f32 to vector<8x384xf32>
    %90 = arith.mulf %89, %88 : vector<8x384xf32>
    %91 = math.tanh %90 : vector<8x384xf32>
    %cst_40 = arith.constant 1.000000e+00 : f32
    %92 = vector.broadcast %cst_40 : f32 to vector<8x384xf32>
    %93 = arith.addf %91, %92 : vector<8x384xf32>
    %cst_41 = arith.constant 5.000000e-01 : f32
    %94 = vector.broadcast %cst_41 : f32 to vector<8x384xf32>
    %95 = arith.mulf %94, %93 : vector<8x384xf32>
    %96 = vector.extract_strided_slice %95 {offsets = [0, 0], sizes = [8, 128], strides = [1, 1]} : vector<8x384xf32> to vector<8x128xf32>
    %97 = vector.extract_strided_slice %95 {offsets = [0, 128], sizes = [8, 128], strides = [1, 1]} : vector<8x384xf32> to vector<8x128xf32>
    %98 = vector.extract_strided_slice %95 {offsets = [0, 256], sizes = [8, 128], strides = [1, 1]} : vector<8x384xf32> to vector<8x128xf32>
    %99 = vector.extract_strided_slice %87 {offsets = [0, 384], sizes = [8, 128], strides = [1, 1]} : vector<8x512xf32> to vector<8x128xf32>
    %100 = math.tanh %99 : vector<8x128xf32>
    %101 = arith.mulf %97, %79 : vector<8x128xf32>
    %102 = arith.mulf %96, %100 : vector<8x128xf32>
    %103 = arith.addf %101, %102 : vector<8x128xf32>
    %104 = math.tanh %103 : vector<8x128xf32>
    %105 = arith.mulf %98, %104 : vector<8x128xf32>
    %c4_i32 = arith.constant 4 : i32
    %106 = arith.index_cast %c4_i32 : i32 to index
    %c0_42 = arith.constant 0 : index
    %c0_43 = arith.constant 0 : index
    %107 = vector.load %arg8[%106, %c0_42, %c0_43] : memref<8x8x512xf32, #tpu.memory_space<vmem>>, vector<1x8x512xf32>
    %108 = vector.shape_cast %107 : vector<1x8x512xf32> to vector<8x512xf32>
    %c0_44 = arith.constant 0 : index
    %c0_45 = arith.constant 0 : index
    %109 = vector.load %arg3[%c0_44, %c0_45] : memref<128x512xf32, #tpu.memory_space<vmem>>, vector<128x512xf32>
    %cst_46 = arith.constant dense<0.000000e+00> : vector<8x512xf32>
    %110 = tpu.matmul %105, %109, %cst_46 {dimension_numbers = #tpu.dot_dimension_numbers<[1], [0], [0], [1], [0, 0, 1, 1], [], []>} : vector<8x128xf32>, vector<128x512xf32>, vector<8x512xf32> -> vector<8x512xf32>
    %111 = arith.addf %108, %110 : vector<8x512xf32>
    %112 = vector.extract_strided_slice %111 {offsets = [0, 0], sizes = [8, 384], strides = [1, 1]} : vector<8x512xf32> to vector<8x384xf32>
    %cst_47 = arith.constant 5.000000e-01 : f32
    %113 = vector.broadcast %cst_47 : f32 to vector<8x384xf32>
    %114 = arith.mulf %113, %112 : vector<8x384xf32>
    %115 = math.tanh %114 : vector<8x384xf32>
    %cst_48 = arith.constant 1.000000e+00 : f32
    %116 = vector.broadcast %cst_48 : f32 to vector<8x384xf32>
    %117 = arith.addf %115, %116 : vector<8x384xf32>
    %cst_49 = arith.constant 5.000000e-01 : f32
    %118 = vector.broadcast %cst_49 : f32 to vector<8x384xf32>
    %119 = arith.mulf %118, %117 : vector<8x384xf32>
    %120 = vector.extract_strided_slice %119 {offsets = [0, 0], sizes = [8, 128], strides = [1, 1]} : vector<8x384xf32> to vector<8x128xf32>
    %121 = vector.extract_strided_slice %119 {offsets = [0, 128], sizes = [8, 128], strides = [1, 1]} : vector<8x384xf32> to vector<8x128xf32>
    %122 = vector.extract_strided_slice %119 {offsets = [0, 256], sizes = [8, 128], strides = [1, 1]} : vector<8x384xf32> to vector<8x128xf32>
    %123 = vector.extract_strided_slice %111 {offsets = [0, 384], sizes = [8, 128], strides = [1, 1]} : vector<8x512xf32> to vector<8x128xf32>
    %124 = math.tanh %123 : vector<8x128xf32>
    %125 = arith.mulf %121, %103 : vector<8x128xf32>
    %126 = arith.mulf %120, %124 : vector<8x128xf32>
    %127 = arith.addf %125, %126 : vector<8x128xf32>
    %128 = math.tanh %127 : vector<8x128xf32>
    %129 = arith.mulf %122, %128 : vector<8x128xf32>
    %c5_i32 = arith.constant 5 : i32
    %130 = arith.index_cast %c5_i32 : i32 to index
    %c0_50 = arith.constant 0 : index
    %c0_51 = arith.constant 0 : index
    %131 = vector.load %arg8[%130, %c0_50, %c0_51] : memref<8x8x512xf32, #tpu.memory_space<vmem>>, vector<1x8x512xf32>
    %132 = vector.shape_cast %131 : vector<1x8x512xf32> to vector<8x512xf32>
    %c0_52 = arith.constant 0 : index
    %c0_53 = arith.constant 0 : index
    %133 = vector.load %arg3[%c0_52, %c0_53] : memref<128x512xf32, #tpu.memory_space<vmem>>, vector<128x512xf32>
    %cst_54 = arith.constant dense<0.000000e+00> : vector<8x512xf32>
    %134 = tpu.matmul %129, %133, %cst_54 {dimension_numbers = #tpu.dot_dimension_numbers<[1], [0], [0], [1], [0, 0, 1, 1], [], []>} : vector<8x128xf32>, vector<128x512xf32>, vector<8x512xf32> -> vector<8x512xf32>
    %135 = arith.addf %132, %134 : vector<8x512xf32>
    %136 = vector.extract_strided_slice %135 {offsets = [0, 0], sizes = [8, 384], strides = [1, 1]} : vector<8x512xf32> to vector<8x384xf32>
    %cst_55 = arith.constant 5.000000e-01 : f32
    %137 = vector.broadcast %cst_55 : f32 to vector<8x384xf32>
    %138 = arith.mulf %137, %136 : vector<8x384xf32>
    %139 = math.tanh %138 : vector<8x384xf32>
    %cst_56 = arith.constant 1.000000e+00 : f32
    %140 = vector.broadcast %cst_56 : f32 to vector<8x384xf32>
    %141 = arith.addf %139, %140 : vector<8x384xf32>
    %cst_57 = arith.constant 5.000000e-01 : f32
    %142 = vector.broadcast %cst_57 : f32 to vector<8x384xf32>
    %143 = arith.mulf %142, %141 : vector<8x384xf32>
    %144 = vector.extract_strided_slice %143 {offsets = [0, 0], sizes = [8, 128], strides = [1, 1]} : vector<8x384xf32> to vector<8x128xf32>
    %145 = vector.extract_strided_slice %143 {offsets = [0, 128], sizes = [8, 128], strides = [1, 1]} : vector<8x384xf32> to vector<8x128xf32>
    %146 = vector.extract_strided_slice %143 {offsets = [0, 256], sizes = [8, 128], strides = [1, 1]} : vector<8x384xf32> to vector<8x128xf32>
    %147 = vector.extract_strided_slice %135 {offsets = [0, 384], sizes = [8, 128], strides = [1, 1]} : vector<8x512xf32> to vector<8x128xf32>
    %148 = math.tanh %147 : vector<8x128xf32>
    %149 = arith.mulf %145, %127 : vector<8x128xf32>
    %150 = arith.mulf %144, %148 : vector<8x128xf32>
    %151 = arith.addf %149, %150 : vector<8x128xf32>
    %152 = math.tanh %151 : vector<8x128xf32>
    %153 = arith.mulf %146, %152 : vector<8x128xf32>
    %c6_i32 = arith.constant 6 : i32
    %154 = arith.index_cast %c6_i32 : i32 to index
    %c0_58 = arith.constant 0 : index
    %c0_59 = arith.constant 0 : index
    %155 = vector.load %arg8[%154, %c0_58, %c0_59] : memref<8x8x512xf32, #tpu.memory_space<vmem>>, vector<1x8x512xf32>
    %156 = vector.shape_cast %155 : vector<1x8x512xf32> to vector<8x512xf32>
    %c0_60 = arith.constant 0 : index
    %c0_61 = arith.constant 0 : index
    %157 = vector.load %arg3[%c0_60, %c0_61] : memref<128x512xf32, #tpu.memory_space<vmem>>, vector<128x512xf32>
    %cst_62 = arith.constant dense<0.000000e+00> : vector<8x512xf32>
    %158 = tpu.matmul %153, %157, %cst_62 {dimension_numbers = #tpu.dot_dimension_numbers<[1], [0], [0], [1], [0, 0, 1, 1], [], []>} : vector<8x128xf32>, vector<128x512xf32>, vector<8x512xf32> -> vector<8x512xf32>
    %159 = arith.addf %156, %158 : vector<8x512xf32>
    %160 = vector.extract_strided_slice %159 {offsets = [0, 0], sizes = [8, 384], strides = [1, 1]} : vector<8x512xf32> to vector<8x384xf32>
    %cst_63 = arith.constant 5.000000e-01 : f32
    %161 = vector.broadcast %cst_63 : f32 to vector<8x384xf32>
    %162 = arith.mulf %161, %160 : vector<8x384xf32>
    %163 = math.tanh %162 : vector<8x384xf32>
    %cst_64 = arith.constant 1.000000e+00 : f32
    %164 = vector.broadcast %cst_64 : f32 to vector<8x384xf32>
    %165 = arith.addf %163, %164 : vector<8x384xf32>
    %cst_65 = arith.constant 5.000000e-01 : f32
    %166 = vector.broadcast %cst_65 : f32 to vector<8x384xf32>
    %167 = arith.mulf %166, %165 : vector<8x384xf32>
    %168 = vector.extract_strided_slice %167 {offsets = [0, 0], sizes = [8, 128], strides = [1, 1]} : vector<8x384xf32> to vector<8x128xf32>
    %169 = vector.extract_strided_slice %167 {offsets = [0, 128], sizes = [8, 128], strides = [1, 1]} : vector<8x384xf32> to vector<8x128xf32>
    %170 = vector.extract_strided_slice %167 {offsets = [0, 256], sizes = [8, 128], strides = [1, 1]} : vector<8x384xf32> to vector<8x128xf32>
    %171 = vector.extract_strided_slice %159 {offsets = [0, 384], sizes = [8, 128], strides = [1, 1]} : vector<8x512xf32> to vector<8x128xf32>
    %172 = math.tanh %171 : vector<8x128xf32>
    %173 = arith.mulf %169, %151 : vector<8x128xf32>
    %174 = arith.mulf %168, %172 : vector<8x128xf32>
    %175 = arith.addf %173, %174 : vector<8x128xf32>
    %176 = math.tanh %175 : vector<8x128xf32>
    %177 = arith.mulf %170, %176 : vector<8x128xf32>
    %c7_i32 = arith.constant 7 : i32
    %178 = arith.index_cast %c7_i32 : i32 to index
    %c0_66 = arith.constant 0 : index
    %c0_67 = arith.constant 0 : index
    %179 = vector.load %arg8[%178, %c0_66, %c0_67] : memref<8x8x512xf32, #tpu.memory_space<vmem>>, vector<1x8x512xf32>
    %180 = vector.shape_cast %179 : vector<1x8x512xf32> to vector<8x512xf32>
    %c0_68 = arith.constant 0 : index
    %c0_69 = arith.constant 0 : index
    %181 = vector.load %arg3[%c0_68, %c0_69] : memref<128x512xf32, #tpu.memory_space<vmem>>, vector<128x512xf32>
    %cst_70 = arith.constant dense<0.000000e+00> : vector<8x512xf32>
    %182 = tpu.matmul %177, %181, %cst_70 {dimension_numbers = #tpu.dot_dimension_numbers<[1], [0], [0], [1], [0, 0, 1, 1], [], []>} : vector<8x128xf32>, vector<128x512xf32>, vector<8x512xf32> -> vector<8x512xf32>
    %183 = arith.addf %180, %182 : vector<8x512xf32>
    %184 = vector.extract_strided_slice %183 {offsets = [0, 0], sizes = [8, 384], strides = [1, 1]} : vector<8x512xf32> to vector<8x384xf32>
    %cst_71 = arith.constant 5.000000e-01 : f32
    %185 = vector.broadcast %cst_71 : f32 to vector<8x384xf32>
    %186 = arith.mulf %185, %184 : vector<8x384xf32>
    %187 = math.tanh %186 : vector<8x384xf32>
    %cst_72 = arith.constant 1.000000e+00 : f32
    %188 = vector.broadcast %cst_72 : f32 to vector<8x384xf32>
    %189 = arith.addf %187, %188 : vector<8x384xf32>
    %cst_73 = arith.constant 5.000000e-01 : f32
    %190 = vector.broadcast %cst_73 : f32 to vector<8x384xf32>
    %191 = arith.mulf %190, %189 : vector<8x384xf32>
    %192 = vector.extract_strided_slice %191 {offsets = [0, 0], sizes = [8, 128], strides = [1, 1]} : vector<8x384xf32> to vector<8x128xf32>
    %193 = vector.extract_strided_slice %191 {offsets = [0, 128], sizes = [8, 128], strides = [1, 1]} : vector<8x384xf32> to vector<8x128xf32>
    %194 = vector.extract_strided_slice %191 {offsets = [0, 256], sizes = [8, 128], strides = [1, 1]} : vector<8x384xf32> to vector<8x128xf32>
    %195 = vector.extract_strided_slice %183 {offsets = [0, 384], sizes = [8, 128], strides = [1, 1]} : vector<8x512xf32> to vector<8x128xf32>
    %196 = math.tanh %195 : vector<8x128xf32>
    %197 = arith.mulf %193, %175 : vector<8x128xf32>
    %198 = arith.mulf %192, %196 : vector<8x128xf32>
    %199 = arith.addf %197, %198 : vector<8x128xf32>
    %200 = math.tanh %199 : vector<8x128xf32>
    %201 = arith.mulf %194, %200 : vector<8x128xf32>
    %c8_i32 = arith.constant 8 : i32
    %c0_74 = arith.constant 0 : index
    %c0_75 = arith.constant 0 : index
    %202 = vector.load %arg5[%c0_74, %c0_75] : memref<128x128xf32, #tpu.memory_space<vmem>>, vector<128x128xf32>
    %cst_76 = arith.constant dense<0.000000e+00> : vector<8x128xf32>
    %203 = tpu.matmul %201, %202, %cst_76 {dimension_numbers = #tpu.dot_dimension_numbers<[1], [0], [0], [1], [0, 0, 1, 1], [], []>} : vector<8x128xf32>, vector<128x128xf32>, vector<8x128xf32> -> vector<8x128xf32>
    %c0_77 = arith.constant 0 : index
    %c0_78 = arith.constant 0 : index
    %204 = vector.load %arg6[%c0_77, %c0_78] : memref<1x128xf32, #tpu.memory_space<vmem>>, vector<1x128xf32>
    %205 = vector.broadcast %204 : vector<1x128xf32> to vector<8x128xf32>
    %206 = arith.addf %203, %205 : vector<8x128xf32>
    %c0_79 = arith.constant 0 : index
    %c0_80 = arith.constant 0 : index
    %207 = vector.load %arg7[%c0_79, %c0_80] : memref<8x128xf32, #tpu.memory_space<vmem>>, vector<8x128xf32>
    tpu.vector_store %arg7[%c0_79, %c0_80], %206 {strides = array<i32>} : memref<8x128xf32, #tpu.memory_space<vmem>>, vector<8x128xf32>,
    return
  }
  func.func @transform_0(%arg0: i32) -> (i32, i32) {
    %c0_i32 = arith.constant 0 : i32
    %c0_i32_0 = arith.constant 0 : i32
    %c0_i32_1 = arith.constant 0 : i32
    return %c0_i32, %c0_i32_0 : i32, i32
  }
  func.func @transform_1(%arg0: i32) -> (i32, i32) {
    %c0_i32 = arith.constant 0 : i32
    %c0_i32_0 = arith.constant 0 : i32
    %c0_i32_1 = arith.constant 0 : i32
    return %c0_i32, %c0_i32_0 : i32, i32
  }
  func.func @transform_2(%arg0: i32) -> (i32, i32) {
    %c0_i32 = arith.constant 0 : i32
    %c0_i32_0 = arith.constant 0 : i32
    %c0_i32_1 = arith.constant 0 : i32
    return %c0_i32, %c0_i32_0 : i32, i32
  }
  func.func @transform_3(%arg0: i32) -> (i32, i32) {
    %c0_i32 = arith.constant 0 : i32
    %c0_i32_0 = arith.constant 0 : i32
    %c0_i32_1 = arith.constant 0 : i32
    return %c0_i32, %c0_i32_0 : i32, i32
  }
  func.func @transform_4(%arg0: i32) -> (i32, i32) {
    %c0_i32 = arith.constant 0 : i32
    %c0_i32_0 = arith.constant 0 : i32
    %c0_i32_1 = arith.constant 0 : i32
    return %c0_i32, %c0_i32_0 : i32, i32
  }
  func.func @transform_5(%arg0: i32) -> (i32, i32) {
    %c0_i32 = arith.constant 0 : i32
    %c0_i32_0 = arith.constant 0 : i32
    %c0_i32_1 = arith.constant 0 : i32
    return %c0_i32, %c0_i32_0 : i32, i32
  }
  func.func @transform_6(%arg0: i32) -> (i32, i32) {
    %c0_i32 = arith.constant 0 : i32
    %c0_i32_0 = arith.constant 0 : i32
    %c0_i32_1 = arith.constant 0 : i32
    return %c0_i32, %c0_i32_0 : i32, i32
  }
}

</mosaic_0001>

<bundles_post_ra>
// kernel: tpu_custom_call.1
= control target key start
LH: loop header
LB: loop body
LE: loop exit
PB: predicated region body
PF: predicated region fallthrough
CT: control target
= control target key end

     0   :  { %11 = vsyncpa [#allocation4], 0  ;;  %s3267_s0 = inlined_call_operand.vmem [shape: f32[64,4], index: 0, kind: input, shape index: {}]   ;;  %s3268_s1 = inlined_call_operand.vmem [shape: f32[4,512], index: 1, kind: input, shape index: {}]   ;;  %s3269_s2 = inlined_call_operand.hbm [shape: f32[128,512], index: 2, kind: input, shape index: {}]   ;;  %s3270_s3 = inlined_call_operand.vmem [shape: f32[1,512], index: 3, kind: input, shape index: {}]   ;;  %s3271_s4 = inlined_call_operand.hbm [shape: f32[128,128], index: 4, kind: input, shape index: {}]   ;;  %s3272_s5 = inlined_call_operand.vmem [shape: f32[1,128], index: 5, kind: input, shape index: {}]   ;;  %s3273_s6 = inlined_call_operand.hbm [shape: f32[8,128], index: 6, kind: output, shape index: {}]  }
   0x1   :  { %12 = vsyncpa [#allocation7], 0 }
   0x2   :  { %13 = vsyncpa [#allocation5], 0  ;;  %s2199_s21 = smov [#allocation3]  }
   0x3   :  { %s23_s22 = sshll.u32 %s2199_s21, 4  ;;  %s24_s22 = int_to_ptr.vmem [resolvable:$true] %s23_s22 }
   0x4   :  { %s2141_s23 = scalar_lea.vmem %s24_s22, 8192  ;;  %p2146_p1 = scmp.lt.s32.totalorder %s24_s22, %s24_s22 }
   0x5   :  { %p2142_p0 = scmp.ne.s32.totalorder %s24_s22, %s2141_s23  ;;  %p2147_p2 = scmp.lt.s32.totalorder %s2141_s23, %s2141_s23 }
   0x7   :  { %p2148_p3 = por %p2147_p2, %p2146_p1 }
   0x9   :  { %p2149_p4 = pnand %p2148_p3, %p2142_p0 }
   0xb   :  { %2152 = shalt.err (!%p2149_p4)
}
   0xc   :  { %s2200_s24 = smov 512   ;;  %s2201_s25 = smov 32  }
   0xd   :  { %29 = dma.hbm_to_vmem [thread:$0]  %s3269_s2, 8192, %s24_s22, [#allocation4], %s2200_s24, %s2200_s24, %s2201_s25  }
   0xe   :  { %s2202_s28 = smov [#allocation6]  }
   0xf   :  { %s37_s29 = sshll.u32 %s2202_s28, 4  ;;  %s38_s29 = int_to_ptr.vmem [resolvable:$true] %s37_s29 }
  0x10   :  { %s2161_s30 = scalar_lea.vmem %s38_s29, 2048  ;;  %p2166_p6 = scmp.lt.s32.totalorder %s38_s29, %s38_s29 }
  0x11   :  { %p2162_p5 = scmp.ne.s32.totalorder %s38_s29, %s2161_s30  ;;  %p2167_p7 = scmp.lt.s32.totalorder %s2161_s30, %s2161_s30 }
  0x13   :  { %p2168_p8 = por %p2167_p7, %p2166_p6 }
  0x15   :  { %p2169_p9 = pnand %p2168_p8, %p2162_p5 }
  0x17   :  { %2172 = shalt.err (!%p2169_p9)
}
  0x18   :  { %s2203_s7 = smov 128   ;;  %s2204_s8 = smov 8  }
  0x19   :  { %43 = dma.hbm_to_vmem [thread:$0]  %s3271_s4, 2048, %s38_s29, [#allocation7], %s2203_s7, %s2203_s7, %s2204_s8  }
  0x1a   :  { %2193 = dma.done.wait [#allocation4], 8192  }
  0x1b   :  { %2194 = vsyncadd [#allocation4], 4294959104 }
  0x1c   :  { %2195 = dma.done.wait [#allocation7], 2048  }
  0x1d   :  { %2196 = vsyncadd [#allocation7], 4294965248  ;;  %v3274_v0 = vmov 0.0   ;;  %v60_v1 = vld [vmem:[%s3268_s1] sm:$0xff]  ;;  %vm113_vm0 = vcmask 1043456   ;;  %v61_v2 = vld [vmem:[%s3268_s1 + $0x8] sm:$0xff] }
  0x1e   :  { %186 = vmatprep.mubr.f32.mxu0 %v3274_v0  ;;  %299 = vmatprep.mubr.f32.mxu1 %v3274_v0  ;;  %v86_v3 = vcombine.high %v60_v1, %v60_v1  ;;  %v87_v4 = vcombine.high %v61_v2, %v61_v2  ;;  %v52_v5 = vld [vmem:[%s3267_s0] sm:$0xff]  ;;  %vm88_vm1 = vcmask 31744   ;;  %v2260_v6 = vld [vmem:[#allocation3 + $0x1e8] sm:$0xff]  ;;  %v2262_v7 = vld [vmem:[#allocation3 + $0x1f8] sm:$0xff]  ;;  %vm2206_vm2 = vmmov 0   ;;  %s2207_s30 = smov [#allocation8]  }
  0x1f   :  { %3366 = vst [vmem:[#allocation12_spill] sm:$0xff] %v2260_v6  ;;  %3367 = vst [vmem:[#allocation13_spill] sm:$0xff] %v2262_v7  ;;  %v2264_v8 = vld [vmem:[#allocation3 + $0x1e0] sm:$0xff]  ;;  %v2266_v9 = vld [vmem:[#allocation3 + $0x1f0] sm:$0xff]  ;;  %s1895_s7 = sshll.u32 %s2207_s30, 4  ;;  %s1896_s7 = int_to_ptr.vmem [resolvable:$true] %s1895_s7 }
  0x20   :  { %1905 = vmatprep.subr.msk.mxu0 %vm113_vm0, %v86_v3  ;;  %1915 = vmatprep.subr.msk.mxu1 %vm113_vm0, %v87_v4  ;;  %v2270_v10 = vld [vmem:[#allocation3 + $0x1c8] sm:$0xff]  ;;  %v2272_v11 = vld [vmem:[#allocation3 + $0x1d8] sm:$0xff]  ;;  %v2278_v12 = vld [vmem:[#allocation3 + $0x1c0] sm:$0xff]  ;;  %s2173_s8 = scalar_lea.vmem %s1896_s7, 128  ;;  %p2178_p11 = scmp.lt.s32.totalorder %s1896_s7, %s1896_s7 }
  0x21   :  { %1906 = vmatpush1.msk.msra.mxu0 %vm113_vm0, %v60_v1  ;;  %1916 = vmatpush1.msk.msra.mxu1 %vm113_vm0, %v61_v2  ;;  %v2280_v13 = vld [vmem:[#allocation3 + $0x1d0] sm:$0xff]  ;;  %v53_v14 = vld [vmem:[%s3267_s0 + $0x8] sm:$0xff]  ;;  %v2291_v16 = vld [vmem:[#allocation3 + $0x1b8] sm:$0xff]  ;;  %p2174_p10 = scmp.ne.s32.totalorder %s1896_s7, %s2173_s8  ;;  %p2179_p12 = scmp.lt.s32.totalorder %s2173_s8, %s2173_s8 }
  0x22   :  { %1907 = vmatmul.mubr.msk.f32.vlgmr.msra.gmra.mxu0 %vm88_vm1, %v52_v5  ;;  %1917 = vmatmul.mubr.msk.f32.vlgmr.msra.gmra.mxu1 %vm88_vm1, %v52_v5  ;;  %v2289_v15 = vld [vmem:[#allocation3 + $0x1a8] sm:$0xff]  ;;  %v2295_v17 = vld [vmem:[#allocation3 + $0x1a0] sm:$0xff]  ;;  %v2297_v18 = vld [vmem:[#allocation3 + $0x1b0] sm:$0xff] }
  0x23   :  { %448 = vmatprep.subr.mxu0 %v2260_v6  ;;  %519 = vmatprep.subr.mxu1 %v2262_v7  ;;  %v2301_v19 = vld [vmem:[#allocation3 + $0x188] sm:$0xff]  ;;  %v2303_v20 = vld [vmem:[#allocation3 + $0x198] sm:$0xff]  ;;  %v2309_v21 = vld [vmem:[#allocation3 + $0x180] sm:$0xff]  ;;  %p2180_p13 = por %p2179_p12, %p2178_p11 }
  0x24   :  { %449 = vmatpush1.msra.mxu0 %v2264_v8  ;;  %520 = vmatpush1.msra.mxu1 %v2266_v9  ;;  %v2311_v22 = vld [vmem:[#allocation3 + $0x190] sm:$0xff]  ;;  %v2320_v24 = vld [vmem:[#allocation3 + $0x168] sm:$0xff]  ;;  %v2322_v25 = vld [vmem:[#allocation3 + $0x178] sm:$0xff] }
  0x25   :  { %450 = vmatprep.subr.mxu0 %v2270_v10  ;;  %521 = vmatprep.subr.mxu1 %v2272_v11  ;;  %v54_v23 = vld [vmem:[%s3267_s0 + $0x10] sm:$0xff]  ;;  %v2326_v26 = vld [vmem:[#allocation3 + $0x160] sm:$0xff]  ;;  %v2332_v28 = vld [vmem:[#allocation3 + $0x148] sm:$0xff]  ;;  %p2181_p0 = pnand %p2180_p13, %p2174_p10 }
  0x26   :  { %192 = vmatprep.mubr.f32.mxu0 %v3274_v0  ;;  %305 = vmatprep.mubr.f32.mxu1 %v3274_v0  ;;  %v2328_v27 = vld [vmem:[#allocation3 + $0x170] sm:$0xff]  ;;  %v2334_v29 = vld [vmem:[#allocation3 + $0x158] sm:$0xff]  ;;  %v2340_v30 = vld [vmem:[#allocation3 + $0x140] sm:$0xff] }
  0x27   :  { %451 = vmatpush1.msra.mxu0 %v2278_v12  ;;  %522 = vmatpush1.msra.mxu1 %v2280_v13  ;;  %v2342_v31 = vld [vmem:[#allocation3 + $0x150] sm:$0xff]  ;;  %v55_v32 = vld [vmem:[%s3267_s0 + $0x18] sm:$0xff]  ;;  %v2351_v33 = vld [vmem:[#allocation3 + $0x128] sm:$0xff] }
  0x28   :  { %1908 = vmatmul.mubr.msk.f32.gmra.mxu0 %vm88_vm1, %v53_v14  ;;  %1918 = vmatmul.mubr.msk.f32.gmra.mxu1 %vm88_vm1, %v53_v14  ;;  %v2353_v34 = vld [vmem:[#allocation3 + $0x138] sm:$0xff]  ;;  %v2357_v35 = vld [vmem:[#allocation3 + $0x120] sm:$0xff]  ;;  %v2359_v36 = vld [vmem:[#allocation3 + $0x130] sm:$0xff] }
  0x29   :  { %452 = vmatprep.subr.mxu0 %v2289_v15  ;;  %523 = vmatprep.subr.mxu1 %v2291_v16  ;;  %v2363_v37 = vld [vmem:[#allocation3 + $0x108] sm:$0xff]  ;;  %v2365_v38 = vld [vmem:[#allocation3 + $0x118] sm:$0xff]  ;;  %v2371_v39 = vld [vmem:[#allocation3 + $0x100] sm:$0xff] }
  0x2a   :  { %453 = vmatpush1.msra.mxu0 %v2295_v17  ;;  %524 = vmatpush1.msra.mxu1 %v2297_v18  ;;  %v2373_v40 = vld [vmem:[#allocation3 + $0x110] sm:$0xff]  ;;  %v56_v41 = vld [vmem:[%s3267_s0 + $0x20] sm:$0xff]  ;;  %v2382_v42 = vld [vmem:[#allocation3 + $0xe8] sm:$0xff] }
  0x2b   :  { %454 = vmatprep.subr.mxu0 %v2301_v19  ;;  %525 = vmatprep.subr.mxu1 %v2303_v20  ;;  %v2384_v43 = vld [vmem:[#allocation3 + $0xf8] sm:$0xff]  ;;  %v2388_v44 = vld [vmem:[#allocation3 + $0xe0] sm:$0xff]  ;;  %v2390_v45 = vld [vmem:[#allocation3 + $0xf0] sm:$0xff] }
  0x2c   :  { %198 = vmatprep.mubr.f32.mxu0 %v3274_v0  ;;  %311 = vmatprep.mubr.f32.mxu1 %v3274_v0  ;;  %v2394_v46 = vld [vmem:[#allocation3 + $0xc8] sm:$0xff]  ;;  %v2396_v47 = vld [vmem:[#allocation3 + $0xd8] sm:$0xff]  ;;  %v2402_v48 = vld [vmem:[#allocation3 + $0xc0] sm:$0xff] }
  0x2d   :  { %455 = vmatpush1.msra.mxu0 %v2309_v21  ;;  %526 = vmatpush1.msra.mxu1 %v2311_v22  ;;  %v2404_v49 = vld [vmem:[#allocation3 + $0xd0] sm:$0xff]  ;;  %v57_v50 = vld [vmem:[%s3267_s0 + $0x28] sm:$0xff]  ;;  %v2415_v52 = vld [vmem:[#allocation3 + $0xb8] sm:$0xff] }
  0x2e   :  { %1909 = vmatmul.mubr.msk.f32.gmra.mxu0 %vm88_vm1, %v54_v23  ;;  %1919 = vmatmul.mubr.msk.f32.gmra.mxu1 %vm88_vm1, %v54_v23  ;;  %v2413_v51 = vld [vmem:[#allocation3 + $0xa8] sm:$0xff]  ;;  %v2419_v53 = vld [vmem:[#allocation3 + $0xa0] sm:$0xff]  ;;  %v2421_v54 = vld [vmem:[#allocation3 + $0xb0] sm:$0xff] }
  0x2f   :  { %456 = vmatprep.subr.mxu0 %v2320_v24  ;;  %527 = vmatprep.subr.mxu1 %v2322_v25  ;;  %3368 = vst [vmem:[#allocation14_spill] sm:$0xff] %v2421_v54  ;;  %v2425_v55 = vld [vmem:[#allocation3 + $0x88] sm:$0xff]  ;;  %v2427_v56 = vld [vmem:[#allocation3 + $0x98] sm:$0xff]  ;;  %v2433_v57 = vld [vmem:[#allocation3 + $0x80] sm:$0xff] }
  0x30   :  { %457 = vmatpush1.msra.mxu0 %v2326_v26  ;;  %528 = vmatpush1.msra.mxu1 %v2328_v27  ;;  %3369 = vst [vmem:[#allocation15_spill] sm:$0xff] %v2425_v55  ;;  %3370 = vst [vmem:[#allocation16_spill] sm:$0xff] %v2427_v56  ;;  %v2435_v58 = vld [vmem:[#allocation3 + $0x90] sm:$0xff]  ;;  %v2444_v60 = vld [vmem:[#allocation3 + $0x68] sm:$0xff] }
  0x31   :  { %458 = vmatprep.subr.mxu0 %v2332_v28  ;;  %529 = vmatprep.subr.mxu1 %v2334_v29  ;;  %3371 = vst [vmem:[#allocation17_spill] sm:$0xff] %v2433_v57  ;;  %3372 = vst [vmem:[#allocation18_spill] sm:$0xff] %v2435_v58  ;;  %v58_v59 = vld [vmem:[%s3267_s0 + $0x30] sm:$0xff]  ;;  %v2446_v61 = vld [vmem:[#allocation3 + $0x78] sm:$0xff] }
  0x32   :  { %204 = vmatprep.mubr.f32.mxu0 %v3274_v0  ;;  %317 = vmatprep.mubr.f32.mxu1 %v3274_v0  ;;  %3373 = vst [vmem:[#allocation19_spill] sm:$0xff] %v2444_v60  ;;  %3374 = vst [vmem:[#allocation20_spill] sm:$0xff] %v2446_v61  ;;  %v2450_v62 = vld [vmem:[#allocation3 + $0x60] sm:$0xff]  ;;  %v2452_v63 = vld [vmem:[#allocation3 + $0x70] sm:$0xff] }
  0x33   :  { %459 = vmatpush1.msra.mxu0 %v2340_v30  ;;  %530 = vmatpush1.msra.mxu1 %v2342_v31  ;;  %3375 = vst [vmem:[#allocation21_spill] sm:$0xff] %v2450_v62  ;;  %3376 = vst [vmem:[#allocation22_spill] sm:$0xff] %v2452_v63  ;;  %v2456_v1 = vld [vmem:[#allocation3 + $0x48] sm:$0xff]  ;;  %v2458_v2 = vld [vmem:[#allocation3 + $0x58] sm:$0xff] }
  0x34   :  { %1910 = vmatmul.mubr.msk.f32.gmra.mxu0 %vm88_vm1, %v55_v32  ;;  %1920 = vmatmul.mubr.msk.f32.gmra.mxu1 %vm88_vm1, %v55_v32  ;;  %3377 = vst [vmem:[#allocation23_spill] sm:$0xff] %v2456_v1  ;;  %3378 = vst [vmem:[#allocation24_spill] sm:$0xff] %v2458_v2  ;;  %v2464_v3 = vld [vmem:[#allocation3 + $0x40] sm:$0xff]  ;;  %v2466_v4 = vld [vmem:[#allocation3 + $0x50] sm:$0xff] }
  0x35   :  { %460 = vmatprep.subr.mxu0 %v2351_v33  ;;  %531 = vmatprep.subr.mxu1 %v2353_v34  ;;  %3379 = vst [vmem:[#allocation25_spill] sm:$0xff] %v2464_v3  ;;  %3380 = vst [vmem:[#allocation26_spill] sm:$0xff] %v2466_v4  ;;  %v59_v5 = vld [vmem:[%s3267_s0 + $0x38] sm:$0xff]  ;;  %v2475_v14 = vld [vmem:[#allocation3 + $0x28] sm:$0xff] }
  0x36   :  { %461 = vmatpush1.msra.mxu0 %v2357_v35  ;;  %532 = vmatpush1.msra.mxu1 %v2359_v36  ;;  %3381 = vst [vmem:[#allocation27_spill] sm:$0xff] %v2475_v14  ;;  %v2477_v23 = vld [vmem:[#allocation3 + $0x38] sm:$0xff]  ;;  %v2481_v32 = vld [vmem:[#allocation3 + $0x20] sm:$0xff] }
  0x37   :  { %462 = vmatprep.subr.mxu0 %v2363_v37  ;;  %533 = vmatprep.subr.mxu1 %v2365_v38  ;;  %3382 = vst [vmem:[#allocation28_spill] sm:$0xff] %v2477_v23  ;;  %3383 = vst [vmem:[#allocation29_spill] sm:$0xff] %v2481_v32 }
  0x38   :  { %210 = vmatprep.mubr.f32.mxu0 %v3274_v0  ;;  %323 = vmatprep.mubr.f32.mxu1 %v3274_v0 }
  0x39   :  { %463 = vmatpush1.msra.mxu0 %v2371_v39  ;;  %534 = vmatpush1.msra.mxu1 %v2373_v40 }
  0x3a   :  { %1911 = vmatmul.mubr.msk.f32.gmra.mxu0 %vm88_vm1, %v56_v41  ;;  %1921 = vmatmul.mubr.msk.f32.gmra.mxu1 %vm88_vm1, %v56_v41  ;;  %v2483_v41 = vld [vmem:[#allocation3 + $0x30] sm:$0xff] }
  0x3b   :  { %464 = vmatprep.subr.mxu0 %v2382_v42  ;;  %535 = vmatprep.subr.mxu1 %v2384_v43  ;;  %3384 = vst [vmem:[#allocation30_spill] sm:$0xff] %v2483_v41 }
  0x3c   :  { %465 = vmatpush1.msra.mxu0 %v2388_v44  ;;  %536 = vmatpush1.msra.mxu1 %v2390_v45 }
  0x3d   :  { %466 = vmatprep.subr.mxu0 %v2394_v46  ;;  %537 = vmatprep.subr.mxu1 %v2396_v47 }
  0x3e   :  { %216 = vmatprep.mubr.f32.mxu0 %v3274_v0  ;;  %329 = vmatprep.mubr.f32.mxu1 %v3274_v0 }
  0x3f   :  { %467 = vmatpush1.msra.mxu0 %v2402_v48  ;;  %538 = vmatpush1.msra.mxu1 %v2404_v49 }
  0x40   :  { %1912 = vmatmul.mubr.msk.f32.gmra.mxu0 %vm88_vm1, %v57_v50  ;;  %1922 = vmatmul.mubr.msk.f32.gmra.mxu1 %vm88_vm1, %v57_v50  ;;  %v2487_v50 = vld [vmem:[#allocation3 + $0x8] sm:$0xff] }
  0x41   :  { %468 = vmatprep.subr.mxu0 %v2413_v51  ;;  %539 = vmatprep.subr.mxu1 %v2415_v52  ;;  %3385 = vst [vmem:[#allocation31_spill] sm:$0xff] %v2487_v50 }
  0x42   :  { %469 = vmatpush1.msra.mxu0 %v2419_v53  ;;  %540 = vmatpush1.msra.mxu1 %v2421_v54 }
  0x43   :  { %470 = vmatprep.subr.mxu0 %v2425_v55  ;;  %541 = vmatprep.subr.mxu1 %v2427_v56 }
  0x44   :  { %222 = vmatprep.mubr.f32.mxu0 %v3274_v0  ;;  %335 = vmatprep.mubr.f32.mxu1 %v3274_v0 }
  0x45   :  { %471 = vmatpush1.msra.mxu0 %v2433_v57  ;;  %542 = vmatpush1.msra.mxu1 %v2435_v58 }
  0x46   :  { %1913 = vmatmul.mubr.msk.f32.gmra.mxu0 %vm88_vm1, %v58_v59  ;;  %1923 = vmatmul.mubr.msk.f32.gmra.mxu1 %vm88_vm1, %v58_v59  ;;  %v2489_v59 = vld [vmem:[#allocation3 + $0x18] sm:$0xff] }
  0x47   :  { %472 = vmatprep.subr.mxu0 %v2444_v60  ;;  %543 = vmatprep.subr.mxu1 %v2446_v61  ;;  %3386 = vst [vmem:[#allocation32_spill] sm:$0xff] %v2489_v59 }
  0x48   :  { %473 = vmatpush1.msra.mxu0 %v2450_v62  ;;  %544 = vmatpush1.msra.mxu1 %v2452_v63 }
  0x49   :  { %474 = vmatprep.subr.mxu0 %v2456_v1  ;;  %545 = vmatprep.subr.mxu1 %v2458_v2 }
  0x4a   :  { %228 = vmatprep.mubr.f32.mxu0 %v3274_v0  ;;  %341 = vmatprep.mubr.f32.mxu1 %v3274_v0  ;;  %v2493_v0 = vld [vmem:[#allocation3] sm:$0xff] }
  0x4b   :  { %475 = vmatpush1.msra.mxu0 %v2464_v3  ;;  %546 = vmatpush1.msra.mxu1 %v2466_v4  ;;  %3387 = vst [vmem:[#allocation33_spill] sm:$0xff] %v2493_v0  ;;  %v2497_v4 = vld [vmem:[#allocation3 + $0x10] sm:$0xff] }
  0x4c   :  { %1914 = vmatmul.mubr.msk.f32.gmra.mxu0 %vm88_vm1, %v59_v5  ;;  %1924 = vmatmul.mubr.msk.f32.gmra.mxu1 %vm88_vm1, %v59_v5  ;;  %3388 = vst [vmem:[#allocation34_spill] sm:$0xff] %v2497_v4  ;;  %v3389_v5 = vmov 0.0  }
  0x4d   :  { %476 = vmatprep.subr.mxu0 %v2475_v14  ;;  %547 = vmatprep.subr.mxu1 %v2477_v23 }
  0x4e   :  { %477 = vmatpush1.msra.mxu0 %v2481_v32  ;;  %548 = vmatpush1.msra.mxu1 %v2483_v41 }
  0x4f   :  { %478 = vmatprep.subr.mxu0 %v2487_v50  ;;  %549 = vmatprep.subr.mxu1 %v2489_v59 }
  0x50   :  { %479 = vmatpush1.msra.mxu0 %v2493_v0  ;;  %512 = vmatprep.mubr.f32.mxu0 %v3389_v5 }
  0x51   :  { %550 = vmatpush1.msra.mxu1 %v2497_v4  ;;  %583 = vmatprep.mubr.f32.mxu1 %v3389_v5 }
  0x52   :  { %513 = vmatmul.mubr.f32.vlgmr.msra.gmra.mxu0 %v3389_v5  ;;  %584 = vmatmul.mubr.f32.vlgmr.msra.gmra.mxu1 %v3389_v5 }
  0x53   :  { %617 = vmatprep.subr.mxu0 %v2260_v6  ;;  %688 = vmatprep.subr.mxu1 %v2262_v7 }
  0x54   :  { %618 = vmatpush1.msra.mxu0 %v2264_v8  ;;  %689 = vmatpush1.msra.mxu1 %v2266_v9 }
  0x55   :  { %619 = vmatprep.subr.mxu0 %v2270_v10  ;;  %690 = vmatprep.subr.mxu1 %v2272_v11 }
  0x56   :  { %620 = vmatpush1.msra.mxu0 %v2278_v12  ;;  %691 = vmatpush1.msra.mxu1 %v2280_v13 }
  0x57   :  { %621 = vmatprep.subr.mxu0 %v2289_v15  ;;  %692 = vmatprep.subr.mxu1 %v2291_v16 }
  0x58   :  { %622 = vmatpush1.msra.mxu0 %v2295_v17  ;;  %693 = vmatpush1.msra.mxu1 %v2297_v18 }
  0x59   :  { %623 = vmatprep.subr.mxu0 %v2301_v19  ;;  %694 = vmatprep.subr.mxu1 %v2303_v20 }
  0x5a   :  { %624 = vmatpush1.msra.mxu0 %v2309_v21  ;;  %695 = vmatpush1.msra.mxu1 %v2311_v22 }
  0x5b   :  { %625 = vmatprep.subr.mxu0 %v2320_v24  ;;  %696 = vmatprep.subr.mxu1 %v2322_v25 }
  0x5c   :  { %626 = vmatpush1.msra.mxu0 %v2326_v26  ;;  %697 = vmatpush1.msra.mxu1 %v2328_v27 }
  0x5d   :  { %627 = vmatprep.subr.mxu0 %v2332_v28  ;;  %698 = vmatprep.subr.mxu1 %v2334_v29 }
  0x5e   :  { %628 = vmatpush1.msra.mxu0 %v2340_v30  ;;  %699 = vmatpush1.msra.mxu1 %v2342_v31 }
  0x5f   :  { %629 = vmatprep.subr.mxu0 %v2351_v33  ;;  %700 = vmatprep.subr.mxu1 %v2353_v34 }
  0x60   :  { %630 = vmatpush1.msra.mxu0 %v2357_v35  ;;  %701 = vmatpush1.msra.mxu1 %v2359_v36 }
  0x61   :  { %631 = vmatprep.subr.mxu0 %v2363_v37  ;;  %702 = vmatprep.subr.mxu1 %v2365_v38 }
  0x62   :  { %632 = vmatpush1.msra.mxu0 %v2371_v39  ;;  %703 = vmatpush1.msra.mxu1 %v2373_v40 }
  0x63   :  { %633 = vmatprep.subr.mxu0 %v2382_v42  ;;  %704 = vmatprep.subr.mxu1 %v2384_v43 }
  0x64   :  { %634 = vmatpush1.msra.mxu0 %v2388_v44  ;;  %705 = vmatpush1.msra.mxu1 %v2390_v45 }
  0x65   :  { %635 = vmatprep.subr.mxu0 %v2394_v46  ;;  %706 = vmatprep.subr.mxu1 %v2396_v47 }
  0x66   :  { %636 = vmatpush1.msra.mxu0 %v2402_v48  ;;  %707 = vmatpush1.msra.mxu1 %v2404_v49 }
  0x67   :  { %637 = vmatprep.subr.mxu0 %v2413_v51  ;;  %708 = vmatprep.subr.mxu1 %v2415_v52 }
  0x68   :  { %638 = vmatpush1.msra.mxu0 %v2419_v53  ;;  %709 = vmatpush1.msra.mxu1 %v2421_v54 }
  0x69   :  { %639 = vmatprep.subr.mxu0 %v2425_v55  ;;  %710 = vmatprep.subr.mxu1 %v2427_v56  ;;  %v3390_v55 = vld [vmem:[#allocation26_spill] sm:$0xff] }
  0x6a   :  { %640 = vmatpush1.msra.mxu0 %v2433_v57  ;;  %711 = vmatpush1.msra.mxu1 %v2435_v58 }
  0x6b   :  { %641 = vmatprep.subr.mxu0 %v2444_v60  ;;  %712 = vmatprep.subr.mxu1 %v2446_v61 }
  0x6c   :  { %642 = vmatpush1.msra.mxu0 %v2450_v62  ;;  %713 = vmatpush1.msra.mxu1 %v2452_v63 }
  0x6d   :  { %643 = vmatprep.subr.mxu0 %v2456_v1  ;;  %714 = vmatprep.subr.mxu1 %v2458_v2 }
  0x6e   :  { %644 = vmatpush1.msra.mxu0 %v2464_v3  ;;  %715 = vmatpush1.msra.mxu1 %v3390_v55 }
  0x6f   :  { %645 = vmatprep.subr.mxu0 %v2475_v14  ;;  %716 = vmatprep.subr.mxu1 %v2477_v23  ;;  %v64_v23 = vlaneseq }
  0x70   :  { %646 = vmatpush1.msra.mxu0 %v2481_v32  ;;  %717 = vmatpush1.msra.mxu1 %v2483_v41 }
  0x71   :  { %647 = vmatprep.subr.mxu0 %v2487_v50  ;;  %718 = vmatprep.subr.mxu1 %v2489_v59  ;;  %v65_v32 = vshrl.u32 %v64_v23, 7 }
  0x72   :  { %648 = vmatpush1.msra.mxu0 %v2493_v0  ;;  %681 = vmatprep.mubr.f32.mxu0 %v3389_v5  ;;  %v62_v0 = vld [vmem:[%s3270_s3] sm:$0xf] }
  0x73   :  { %719 = vmatpush1.msra.mxu1 %v2497_v4  ;;  %752 = vmatprep.mubr.f32.mxu1 %v3389_v5  ;;  %v66_v50 = vsub.s32 0, %v65_v32  ;;  %v74_v59 = vsub.s32 2, %v65_v32  ;;  %v70_v5 = vsub.s32 1, %v65_v32 }
  0x74   :  { %786 = vmatprep.subr.mxu0 %v2260_v6  ;;  %857 = vmatprep.subr.mxu1 %v2262_v7  ;;  %v78_v6 = vsub.s32 3, %v65_v32 }
  0x75   :  { %v67_v3 = vrot.slane %v62_v0, %v66_v50  ;;  %v2586_v7 = vrot.slane %v62_v0, %v74_v59  ;;  %v71_v1 = vrot.slane %v62_v0, %v70_v5 }
  0x76   :  { %v2588_v63 = vrot.slane %v62_v0, %v78_v6 }
  0xe2   :  { %v2575_v14 = vpop.f32.mrf.mxu0  ;;  %v2577_v41 = vpop.f32.mrf.mxu1 }
  0xe4   :  { %v2582_v55 = vpop.f32.mrf.mxu0  ;;  %v2584_v4 = vpop.f32.mrf.mxu1 }
  0xe8   :  { %v194_v23 = vpop.f32.mrf.mxu0  ;;  %v307_v2 = vpop.f32.mrf.mxu1 }
  0xe9   :  { %v2590_v62 = vadd.f32 %v194_v23, %v67_v3  ;;  %v2593_v61 = vadd.f32 %v307_v2, %v2586_v7 }
  0xea   :  { %v196_v60 = vpop.f32.mrf.mxu0  ;;  %v309_v58 = vpop.f32.mrf.mxu1 }
  0xeb   :  { %3391 = vst [vmem:[#allocation35_spill] sm:$0xff] %v2590_v62  ;;  %3392 = vst [vmem:[#allocation36_spill] sm:$0xff] %v2593_v61  ;;  %v2595_v57 = vadd.f32 %v196_v60, %v71_v1  ;;  %v2598_v56 = vadd.f32 %v309_v58, %v2588_v63 }
  0xed   :  { %3393 = vst [vmem:[#allocation37_spill] sm:$0xff] %v2595_v57  ;;  %3394 = vst [vmem:[#allocation38_spill] sm:$0xff] %v2598_v56 }
  0xee   :  { %v200_v32 = vpop.f32.mrf.mxu0  ;;  %v313_v50 = vpop.f32.mrf.mxu1 }
  0xef   :  { %v2600_v59 = vadd.f32 %v200_v32, %v67_v3  ;;  %v2603_v5 = vadd.f32 %v313_v50, %v2586_v7 }
  0xf0   :  { %v202_v0 = vpop.f32.mrf.mxu0  ;;  %v315_v6 = vpop.f32.mrf.mxu1 }
  0xf1   :  { %3395 = vst [vmem:[#allocation39_spill] sm:$0xff] %v2600_v59  ;;  %3396 = vst [vmem:[#allocation40_spill] sm:$0xff] %v2603_v5  ;;  %v2605_v23 = vadd.f32 %v202_v0, %v71_v1  ;;  %v2608_v2 = vadd.f32 %v315_v6, %v2588_v63 }
  0xf3   :  { %3397 = vst [vmem:[#allocation41_spill] sm:$0xff] %v2605_v23  ;;  %3398 = vst [vmem:[#allocation42_spill] sm:$0xff] %v2608_v2 }
  0xf4   :  { %v206_v61 = vpop.f32.mrf.mxu0  ;;  %v319_v60 = vpop.f32.mrf.mxu1 }
  0xf5   :  { %v2610_v57 = vadd.f32 %v206_v61, %v67_v3  ;;  %v2613_v58 = vadd.f32 %v319_v60, %v2586_v7 }
  0xf6   :  { %v208_v56 = vpop.f32.mrf.mxu0  ;;  %v321_v32 = vpop.f32.mrf.mxu1 }
  0xf7   :  { %3399 = vst [vmem:[#allocation43_spill] sm:$0xff] %v2610_v57  ;;  %3400 = vst [vmem:[#allocation44_spill] sm:$0xff] %v2613_v58  ;;  %v2615_v59 = vadd.f32 %v208_v56, %v71_v1  ;;  %v2618_v50 = vadd.f32 %v321_v32, %v2588_v63 }
  0xf9   :  { %3401 = vst [vmem:[#allocation45_spill] sm:$0xff] %v2615_v59  ;;  %3402 = vst [vmem:[#allocation46_spill] sm:$0xff] %v2618_v50 }
  0xfa   :  { %v212_v5 = vpop.f32.mrf.mxu0  ;;  %v325_v0 = vpop.f32.mrf.mxu1 }
  0xfb   :  { %v2620_v23 = vadd.f32 %v212_v5, %v67_v3  ;;  %v2623_v6 = vadd.f32 %v325_v0, %v2586_v7 }
  0xfc   :  { %v214_v2 = vpop.f32.mrf.mxu0  ;;  %v327_v61 = vpop.f32.mrf.mxu1 }
  0xfd   :  { %3403 = vst [vmem:[#allocation47_spill] sm:$0xff] %v2620_v23  ;;  %3404 = vst [vmem:[#allocation48_spill] sm:$0xff] %v2623_v6  ;;  %v2625_v57 = vadd.f32 %v214_v2, %v71_v1  ;;  %v2628_v60 = vadd.f32 %v327_v61, %v2588_v63 }
  0xff   :  { %3405 = vst [vmem:[#allocation49_spill] sm:$0xff] %v2625_v57  ;;  %3406 = vst [vmem:[#allocation50_spill] sm:$0xff] %v2628_v60 }
 0x100   :  { %v218_v58 = vpop.f32.mrf.mxu0  ;;  %v331_v56 = vpop.f32.mrf.mxu1 }
 0x101   :  { %v2630_v59 = vadd.f32 %v218_v58, %v67_v3  ;;  %v2633_v32 = vadd.f32 %v331_v56, %v2586_v7 }
 0x102   :  { %v220_v50 = vpop.f32.mrf.mxu0  ;;  %v333_v5 = vpop.f32.mrf.mxu1 }
 0x103   :  { %3407 = vst [vmem:[#allocation51_spill] sm:$0xff] %v2630_v59  ;;  %3408 = vst [vmem:[#allocation52_spill] sm:$0xff] %v2633_v32  ;;  %v2635_v23 = vadd.f32 %v220_v50, %v71_v1  ;;  %v2638_v0 = vadd.f32 %v333_v5, %v2588_v63 }
 0x105   :  { %3409 = vst [vmem:[#allocation53_spill] sm:$0xff] %v2635_v23  ;;  %3410 = vst [vmem:[#allocation54_spill] sm:$0xff] %v2638_v0 }
 0x106   :  { %v224_v6 = vpop.f32.mrf.mxu0  ;;  %v337_v2 = vpop.f32.mrf.mxu1 }
 0x107   :  { %v2640_v57 = vadd.f32 %v224_v6, %v67_v3  ;;  %v2643_v61 = vadd.f32 %v337_v2, %v2586_v7 }
 0x108   :  { %v226_v60 = vpop.f32.mrf.mxu0  ;;  %v339_v58 = vpop.f32.mrf.mxu1 }
 0x109   :  { %3411 = vst [vmem:[#allocation55_spill] sm:$0xff] %v2640_v57  ;;  %3412 = vst [vmem:[#allocation56_spill] sm:$0xff] %v2643_v61  ;;  %v2645_v59 = vadd.f32 %v226_v60, %v71_v1  ;;  %v2648_v56 = vadd.f32 %v339_v58, %v2588_v63  ;;  %v189_v60 = vadd.f32 %v2575_v14, %v67_v3 }
 0x10a   :  { %v191_v58 = vadd.f32 %v2582_v55, %v71_v1 }
 0x10b   :  { %3413 = vst [vmem:[#allocation57_spill] sm:$0xff] %v2645_v59  ;;  %3414 = vst [vmem:[#allocation58_spill] sm:$0xff] %v2648_v56 }
 0x10c   :  { %v230_v32 = vpop.f32.mrf.mxu0  ;;  %v343_v50 = vpop.f32.mrf.mxu1 }
 0x10d   :  { %v2650_v23 = vadd.f32 %v230_v32, %v67_v3  ;;  %v2653_v5 = vadd.f32 %v343_v50, %v2586_v7  ;;  %v304_v50 = vadd.f32 %v2584_v4, %v2588_v63 }
 0x10e   :  { %v232_v0 = vpop.f32.mrf.mxu0  ;;  %v345_v6 = vpop.f32.mrf.mxu1 }
 0x10f   :  { %3415 = vst [vmem:[#allocation59_spill] sm:$0xff] %v2650_v23  ;;  %3416 = vst [vmem:[#allocation60_spill] sm:$0xff] %v2653_v5  ;;  %v2655_v57 = vadd.f32 %v232_v0, %v71_v1  ;;  %v2658_v2 = vadd.f32 %v345_v6, %v2588_v63  ;;  %v302_v6 = vadd.f32 %v2577_v41, %v2586_v7 }
 0x111   :  { %3417 = vst [vmem:[#allocation61_spill] sm:$0xff] %v2655_v57  ;;  %3418 = vst [vmem:[#allocation62_spill] sm:$0xff] %v2658_v2  ;;  %v3440_v57 = vld [vmem:[#allocation34_spill] sm:$0xff] }
 0x112   :  { %v514_v61 = vpop.f32.mrf.mxu0  ;;  %v585_v59 = vpop.f32.mrf.mxu1 }
 0x113   :  { %v590_v56 = vadd.f32 %v514_v61, %v189_v60  ;;  %v592_v3 = vadd.f32 %v585_v59, %v302_v6  ;;  %v3424_v6 = vld [vmem:[#allocation19_spill] sm:$0xff] }
 0x114   :  { %v516_v62 = vpop.f32.mrf.mxu0  ;;  %v587_v54 = vpop.f32.mrf.mxu1 }
 0x115   :  { %v594_v32 = vmul.f32 0.5, %v590_v56  ;;  %v591_v23 = vadd.f32 %v516_v62, %v191_v58  ;;  %v593_v5 = vadd.f32 %v587_v54, %v304_v50  ;;  %v596_v14 = vmul.f32 0.5, %v592_v3  ;;  %v3422_v50 = vld [vmem:[#allocation17_spill] sm:$0xff]  ;;  %v3425_v3 = vld [vmem:[#allocation20_spill] sm:$0xff] }
 0x117   :  { %1989 = vtanh.f32 %v594_v32  ;;  %v595_v0 = vmul.f32 0.5, %v591_v23  ;;  %v3421_v32 = vld [vmem:[#allocation16_spill] sm:$0xff] }
 0x119   :  { %1991 = vtanh.f32 %v595_v0  ;;  %v3423_v0 = vld [vmem:[#allocation18_spill] sm:$0xff] }
 0x11a   :  { %1993 = vtanh.f32 %v593_v5  ;;  %v3419_v5 = vld [vmem:[#allocation14_spill] sm:$0xff] }
 0x11b   :  { %1995 = vtanh.f32 %v596_v14  ;;  %v3426_v14 = vld [vmem:[#allocation21_spill] sm:$0xff] }
 0x124   :  { %v1990_v2 = vpop.eup %1989 }
 0x125   :  { %v600_v55 = vadd.f32 1.0, %v1990_v2  ;;  %v3420_v2 = vld [vmem:[#allocation15_spill] sm:$0xff] }
 0x126   :  { %v1992_v1 = vpop.eup %1991 }
 0x127   :  { %v603_v61 = vmul.f32 0.5, %v600_v55  ;;  %v601_v62 = vadd.f32 1.0, %v1992_v1  ;;  %v1994_v60 = vpop.eup %1993  ;;  %v3427_v55 = vld [vmem:[#allocation22_spill] sm:$0xff]  ;;  %v3428_v1 = vld [vmem:[#allocation23_spill] sm:$0xff] }
 0x128   :  { %v1996_v54 = vpop.eup %1995 }
 0x129   :  { %v604_v56 = vmul.f32 0.5, %v601_v62  ;;  %v608_v63 = vmul.f32 %v1994_v60, %v603_v61  ;;  %v602_v23 = vadd.f32 1.0, %v1996_v54  ;;  %v3429_v61 = vld [vmem:[#allocation24_spill] sm:$0xff]  ;;  %v3430_v62 = vld [vmem:[#allocation25_spill] sm:$0xff]  ;;  %v3432_v60 = vld [vmem:[#allocation27_spill] sm:$0xff] }
 0x12a   :  { %v3435_v54 = vld [vmem:[#allocation30_spill] sm:$0xff] }
 0x12b   :  { %v607_v58 = vmul.f32 0.0, %v604_v56  ;;  %v605_v7 = vmul.f32 0.5, %v602_v23  ;;  %v3431_v56 = vld [vmem:[#allocation26_spill] sm:$0xff]  ;;  %v3436_v23 = vld [vmem:[#allocation31_spill] sm:$0xff] }
 0x12d   :  { %v2666_v4 = vadd.f32 %v608_v63, %v607_v58  ;;  %v3433_v58 = vld [vmem:[#allocation28_spill] sm:$0xff]  ;;  %v3434_v63 = vld [vmem:[#allocation29_spill] sm:$0xff] }
 0x12f   :  { %1997 = vtanh.f32 %v2666_v4 }
 0x13c   :  { %v1998_v41 = vpop.eup %1997 }
 0x13d   :  { %v611_v59 = vmul.f32 %v1998_v41, %v605_v7  ;;  %v3437_v7 = vld [vmem:[#allocation32_spill] sm:$0xff]  ;;  %v3438_v41 = vld [vmem:[#allocation33_spill] sm:$0xff] }
 0x13f   :  { %682 = vmatmul.mubr.f32.vlgmr.msra.gmra.mxu0 %v611_v59  ;;  %753 = vmatmul.mubr.f32.vlgmr.msra.gmra.mxu1 %v611_v59  ;;  %v3439_v59 = vmov 0.0  }
 0x140   :  { %787 = vmatpush1.msra.mxu0 %v2264_v8  ;;  %858 = vmatpush1.msra.mxu1 %v2266_v9 }
 0x141   :  { %788 = vmatprep.subr.mxu0 %v2270_v10  ;;  %859 = vmatprep.subr.mxu1 %v2272_v11 }
 0x142   :  { %789 = vmatpush1.msra.mxu0 %v2278_v12  ;;  %860 = vmatpush1.msra.mxu1 %v2280_v13 }
 0x143   :  { %790 = vmatprep.subr.mxu0 %v2289_v15  ;;  %861 = vmatprep.subr.mxu1 %v2291_v16 }
 0x144   :  { %791 = vmatpush1.msra.mxu0 %v2295_v17  ;;  %862 = vmatpush1.msra.mxu1 %v2297_v18 }
 0x145   :  { %792 = vmatprep.subr.mxu0 %v2301_v19  ;;  %863 = vmatprep.subr.mxu1 %v2303_v20 }
 0x146   :  { %793 = vmatpush1.msra.mxu0 %v2309_v21  ;;  %864 = vmatpush1.msra.mxu1 %v2311_v22 }
 0x147   :  { %794 = vmatprep.subr.mxu0 %v2320_v24  ;;  %865 = vmatprep.subr.mxu1 %v2322_v25 }
 0x148   :  { %795 = vmatpush1.msra.mxu0 %v2326_v26  ;;  %866 = vmatpush1.msra.mxu1 %v2328_v27 }
 0x149   :  { %796 = vmatprep.subr.mxu0 %v2332_v28  ;;  %867 = vmatprep.subr.mxu1 %v2334_v29 }
 0x14a   :  { %797 = vmatpush1.msra.mxu0 %v2340_v30  ;;  %868 = vmatpush1.msra.mxu1 %v2342_v31 }
 0x14b   :  { %798 = vmatprep.subr.mxu0 %v2351_v33  ;;  %869 = vmatprep.subr.mxu1 %v2353_v34 }
 0x14c   :  { %799 = vmatpush1.msra.mxu0 %v2357_v35  ;;  %870 = vmatpush1.msra.mxu1 %v2359_v36 }
 0x14d   :  { %800 = vmatprep.subr.mxu0 %v2363_v37  ;;  %871 = vmatprep.subr.mxu1 %v2365_v38 }
 0x14e   :  { %801 = vmatpush1.msra.mxu0 %v2371_v39  ;;  %872 = vmatpush1.msra.mxu1 %v2373_v40 }
 0x14f   :  { %802 = vmatprep.subr.mxu0 %v2382_v42  ;;  %873 = vmatprep.subr.mxu1 %v2384_v43 }
 0x150   :  { %803 = vmatpush1.msra.mxu0 %v2388_v44  ;;  %874 = vmatpush1.msra.mxu1 %v2390_v45 }
 0x151   :  { %804 = vmatprep.subr.mxu0 %v2394_v46  ;;  %875 = vmatprep.subr.mxu1 %v2396_v47 }
 0x152   :  { %805 = vmatpush1.msra.mxu0 %v2402_v48  ;;  %876 = vmatpush1.msra.mxu1 %v2404_v49 }
 0x153   :  { %806 = vmatprep.subr.mxu0 %v2413_v51  ;;  %877 = vmatprep.subr.mxu1 %v2415_v52 }
 0x154   :  { %807 = vmatpush1.msra.mxu0 %v2419_v53  ;;  %878 = vmatpush1.msra.mxu1 %v3419_v5 }
 0x155   :  { %808 = vmatprep.subr.mxu0 %v3420_v2  ;;  %879 = vmatprep.subr.mxu1 %v3421_v32 }
 0x156   :  { %809 = vmatpush1.msra.mxu0 %v3422_v50  ;;  %880 = vmatpush1.msra.mxu1 %v3423_v0 }
 0x157   :  { %810 = vmatprep.subr.mxu0 %v3424_v6  ;;  %881 = vmatprep.subr.mxu1 %v3425_v3 }
 0x158   :  { %811 = vmatpush1.msra.mxu0 %v3426_v14  ;;  %882 = vmatpush1.msra.mxu1 %v3427_v55  ;;  %v3445_v14 = vld [vmem:[#allocation38_spill] sm:$0xff] }
 0x159   :  { %812 = vmatprep.subr.mxu0 %v3428_v1  ;;  %883 = vmatprep.subr.mxu1 %v3429_v61 }
 0x15a   :  { %813 = vmatpush1.msra.mxu0 %v3430_v62  ;;  %884 = vmatpush1.msra.mxu1 %v3431_v56  ;;  %v3441_v56 = vld [vmem:[#allocation12_spill] sm:$0xff]  ;;  %v3443_v62 = vld [vmem:[#allocation35_spill] sm:$0xff] }
 0x15b   :  { %814 = vmatprep.subr.mxu0 %v3432_v60  ;;  %885 = vmatprep.subr.mxu1 %v3433_v58  ;;  %v3442_v60 = vld [vmem:[#allocation13_spill] sm:$0xff] }
 0x15c   :  { %815 = vmatpush1.msra.mxu0 %v3434_v63  ;;  %886 = vmatpush1.msra.mxu1 %v3435_v54 }
 0x15d   :  { %816 = vmatprep.subr.mxu0 %v3436_v23  ;;  %887 = vmatprep.subr.mxu1 %v3437_v7  ;;  %v3444_v7 = vld [vmem:[#allocation37_spill] sm:$0xff] }
 0x15e   :  { %817 = vmatpush1.msra.mxu0 %v3438_v41  ;;  %850 = vmatprep.mubr.f32.mxu0 %v3439_v59 }
 0x15f   :  { %888 = vmatpush1.msra.mxu1 %v3440_v57  ;;  %921 = vmatprep.mubr.f32.mxu1 %v3439_v59  ;;  %v3446_v57 = vld [vmem:[#allocation36_spill] sm:$0xff] }
 0x160   :  { %955 = vmatprep.subr.mxu0 %v3441_v56  ;;  %1026 = vmatprep.subr.mxu1 %v3442_v60 }
 0x1ff   :  { %v683_v58 = vpop.f32.mrf.mxu0  ;;  %v754_v63 = vpop.f32.mrf.mxu1 }
 0x200   :  { %v759_v54 = vadd.f32 %v683_v58, %v3443_v62  ;;  %v761_v59 = vadd.f32 %v754_v63, %v3446_v57 }
 0x201   :  { %v685_v61 = vpop.f32.mrf.mxu0  ;;  %v756_v23 = vpop.f32.mrf.mxu1 }
 0x202   :  { %v763_v1 = vmul.f32 0.5, %v759_v54  ;;  %v760_v55 = vadd.f32 %v685_v61, %v3444_v7  ;;  %v762_v3 = vadd.f32 %v756_v23, %v3445_v14  ;;  %v765_v56 = vmul.f32 0.5, %v761_v59 }
 0x204   :  { %1999 = vtanh.f32 %v763_v1  ;;  %v764_v41 = vmul.f32 0.5, %v760_v55 }
 0x206   :  { %2001 = vtanh.f32 %v764_v41  ;;  %v3470_v41 = vld [vmem:[#allocation41_spill] sm:$0xff] }
 0x207   :  { %2003 = vtanh.f32 %v762_v3 }
 0x208   :  { %2005 = vtanh.f32 %v765_v56 }
 0x211   :  { %v2000_v6 = vpop.eup %1999 }
 0x212   :  { %v769_v60 = vadd.f32 1.0, %v2000_v6  ;;  %v3469_v6 = vld [vmem:[#allocation39_spill] sm:$0xff] }
 0x213   :  { %v2002_v0 = vpop.eup %2001 }
 0x214   :  { %v772_v50 = vmul.f32 0.5, %v769_v60  ;;  %v770_v62 = vadd.f32 1.0, %v2002_v0  ;;  %v2004_v58 = vpop.eup %2003 }
 0x215   :  { %v2006_v14 = vpop.eup %2005 }
 0x216   :  { %v773_v32 = vmul.f32 0.5, %v770_v62  ;;  %v777_v54 = vmul.f32 %v2004_v58, %v772_v50  ;;  %v771_v3 = vadd.f32 1.0, %v2006_v14  ;;  %v3471_v58 = vld [vmem:[#allocation42_spill] sm:$0xff] }
 0x218   :  { %v776_v61 = vmul.f32 %v773_v32, %v2666_v4  ;;  %v774_v55 = vmul.f32 0.5, %v771_v3  ;;  %v3467_v4 = vld [vmem:[#allocation12_spill] sm:$0xff]  ;;  %v3468_v32 = vld [vmem:[#allocation13_spill] sm:$0xff] }
 0x21a   :  { %v2740_v1 = vadd.f32 %v777_v54, %v776_v61  ;;  %v3472_v61 = vld [vmem:[#allocation40_spill] sm:$0xff] }
 0x21c   :  { %2007 = vtanh.f32 %v2740_v1 }
 0x229   :  { %v2008_v57 = vpop.eup %2007 }
 0x22a   :  { %v780_v63 = vmul.f32 %v2008_v57, %v774_v55 }
 0x22c   :  { %851 = vmatmul.mubr.f32.vlgmr.msra.gmra.mxu0 %v780_v63  ;;  %922 = vmatmul.mubr.f32.vlgmr.msra.gmra.mxu1 %v780_v63 }
 0x22d   :  { %956 = vmatpush1.msra.mxu0 %v2264_v8  ;;  %1027 = vmatpush1.msra.mxu1 %v2266_v9  ;;  %v3447_v8 = vld [vmem:[#allocation16_spill] sm:$0xff]  ;;  %v3448_v9 = vld [vmem:[#allocation17_spill] sm:$0xff] }
 0x22e   :  { %957 = vmatprep.subr.mxu0 %v2270_v10  ;;  %1028 = vmatprep.subr.mxu1 %v2272_v11  ;;  %v3449_v10 = vld [vmem:[#allocation18_spill] sm:$0xff]  ;;  %v3450_v11 = vld [vmem:[#allocation19_spill] sm:$0xff] }
 0x22f   :  { %958 = vmatpush1.msra.mxu0 %v2278_v12  ;;  %1029 = vmatpush1.msra.mxu1 %v2280_v13  ;;  %v3451_v12 = vld [vmem:[#allocation20_spill] sm:$0xff]  ;;  %v3452_v13 = vld [vmem:[#allocation21_spill] sm:$0xff] }
 0x230   :  { %959 = vmatprep.subr.mxu0 %v2289_v15  ;;  %1030 = vmatprep.subr.mxu1 %v2291_v16  ;;  %v3453_v15 = vld [vmem:[#allocation22_spill] sm:$0xff]  ;;  %v3454_v16 = vld [vmem:[#allocation23_spill] sm:$0xff] }
 0x231   :  { %960 = vmatpush1.msra.mxu0 %v2295_v17  ;;  %1031 = vmatpush1.msra.mxu1 %v2297_v18  ;;  %v3455_v17 = vld [vmem:[#allocation24_spill] sm:$0xff]  ;;  %v3456_v18 = vld [vmem:[#allocation25_spill] sm:$0xff] }
 0x232   :  { %961 = vmatprep.subr.mxu0 %v2301_v19  ;;  %1032 = vmatprep.subr.mxu1 %v2303_v20  ;;  %v3457_v19 = vld [vmem:[#allocation26_spill] sm:$0xff]  ;;  %v3458_v20 = vld [vmem:[#allocation27_spill] sm:$0xff] }
 0x233   :  { %962 = vmatpush1.msra.mxu0 %v2309_v21  ;;  %1033 = vmatpush1.msra.mxu1 %v2311_v22  ;;  %v3459_v21 = vld [vmem:[#allocation28_spill] sm:$0xff]  ;;  %v3460_v22 = vld [vmem:[#allocation29_spill] sm:$0xff] }
 0x234   :  { %963 = vmatprep.subr.mxu0 %v2320_v24  ;;  %1034 = vmatprep.subr.mxu1 %v2322_v25  ;;  %v3461_v24 = vld [vmem:[#allocation30_spill] sm:$0xff]  ;;  %v3462_v25 = vld [vmem:[#allocation31_spill] sm:$0xff] }
 0x235   :  { %964 = vmatpush1.msra.mxu0 %v2326_v26  ;;  %1035 = vmatpush1.msra.mxu1 %v2328_v27  ;;  %v3463_v26 = vld [vmem:[#allocation32_spill] sm:$0xff]  ;;  %v3464_v27 = vld [vmem:[#allocation33_spill] sm:$0xff] }
 0x236   :  { %965 = vmatprep.subr.mxu0 %v2332_v28  ;;  %1036 = vmatprep.subr.mxu1 %v2334_v29  ;;  %v3465_v28 = vmov 0.0   ;;  %v3466_v29 = vld [vmem:[#allocation34_spill] sm:$0xff] }
 0x237   :  { %966 = vmatpush1.msra.mxu0 %v2340_v30  ;;  %1037 = vmatpush1.msra.mxu1 %v2342_v31 }
 0x238   :  { %967 = vmatprep.subr.mxu0 %v2351_v33  ;;  %1038 = vmatprep.subr.mxu1 %v2353_v34 }
 0x239   :  { %968 = vmatpush1.msra.mxu0 %v2357_v35  ;;  %1039 = vmatpush1.msra.mxu1 %v2359_v36 }
 0x23a   :  { %969 = vmatprep.subr.mxu0 %v2363_v37  ;;  %1040 = vmatprep.subr.mxu1 %v2365_v38 }
 0x23b   :  { %970 = vmatpush1.msra.mxu0 %v2371_v39  ;;  %1041 = vmatpush1.msra.mxu1 %v2373_v40 }
 0x23c   :  { %971 = vmatprep.subr.mxu0 %v2382_v42  ;;  %1042 = vmatprep.subr.mxu1 %v2384_v43 }
 0x23d   :  { %972 = vmatpush1.msra.mxu0 %v2388_v44  ;;  %1043 = vmatpush1.msra.mxu1 %v2390_v45 }
 0x23e   :  { %973 = vmatprep.subr.mxu0 %v2394_v46  ;;  %1044 = vmatprep.subr.mxu1 %v2396_v47 }
 0x23f   :  { %974 = vmatpush1.msra.mxu0 %v2402_v48  ;;  %1045 = vmatpush1.msra.mxu1 %v2404_v49 }
 0x240   :  { %975 = vmatprep.subr.mxu0 %v2413_v51  ;;  %1046 = vmatprep.subr.mxu1 %v2415_v52 }
 0x241   :  { %976 = vmatpush1.msra.mxu0 %v2419_v53  ;;  %1047 = vmatpush1.msra.mxu1 %v3419_v5 }
 0x242   :  { %977 = vmatprep.subr.mxu0 %v3420_v2  ;;  %1048 = vmatprep.subr.mxu1 %v3447_v8 }
 0x243   :  { %978 = vmatpush1.msra.mxu0 %v3448_v9  ;;  %1049 = vmatpush1.msra.mxu1 %v3449_v10 }
 0x244   :  { %979 = vmatprep.subr.mxu0 %v3450_v11  ;;  %1050 = vmatprep.subr.mxu1 %v3451_v12 }
 0x245   :  { %980 = vmatpush1.msra.mxu0 %v3452_v13  ;;  %1051 = vmatpush1.msra.mxu1 %v3453_v15 }
 0x246   :  { %981 = vmatprep.subr.mxu0 %v3454_v16  ;;  %1052 = vmatprep.subr.mxu1 %v3455_v17 }
 0x247   :  { %982 = vmatpush1.msra.mxu0 %v3456_v18  ;;  %1053 = vmatpush1.msra.mxu1 %v3457_v19 }
 0x248   :  { %983 = vmatprep.subr.mxu0 %v3458_v20  ;;  %1054 = vmatprep.subr.mxu1 %v3459_v21 }
 0x249   :  { %984 = vmatpush1.msra.mxu0 %v3460_v22  ;;  %1055 = vmatpush1.msra.mxu1 %v3461_v24 }
 0x24a   :  { %985 = vmatprep.subr.mxu0 %v3462_v25  ;;  %1056 = vmatprep.subr.mxu1 %v3463_v26 }
 0x24b   :  { %986 = vmatpush1.msra.mxu0 %v3464_v27  ;;  %1019 = vmatprep.mubr.f32.mxu0 %v3465_v28 }
 0x24c   :  { %1057 = vmatpush1.msra.mxu1 %v3466_v29  ;;  %1090 = vmatprep.mubr.f32.mxu1 %v3465_v28 }
 0x24d   :  { %1124 = vmatprep.subr.mxu0 %v3467_v4  ;;  %1195 = vmatprep.subr.mxu1 %v3468_v32 }
 0x2ec   :  { %v852_v50 = vpop.f32.mrf.mxu0  ;;  %v923_v0 = vpop.f32.mrf.mxu1 }
 0x2ed   :  { %v928_v56 = vadd.f32 %v852_v50, %v3469_v6  ;;  %v930_v14 = vadd.f32 %v923_v0, %v3472_v61  ;;  %v2826_v61 = vld [vmem:[#allocation3 + $0x1d8] sm:$0xff] }
 0x2ee   :  { %v854_v60 = vpop.f32.mrf.mxu0  ;;  %v925_v23 = vpop.f32.mrf.mxu1 }
 0x2ef   :  { %v932_v7 = vmul.f32 0.5, %v928_v56  ;;  %v929_v59 = vadd.f32 %v854_v60, %v3470_v41  ;;  %v931_v54 = vadd.f32 %v925_v23, %v3471_v58  ;;  %v934_v3 = vmul.f32 0.5, %v930_v14  ;;  %v2817_v58 = vld [vmem:[#allocation3 + $0x1e0] sm:$0xff] }
 0x2f0   :  { %v2829_v14 = vld [vmem:[#allocation3 + $0x1c0] sm:$0xff] }
 0x2f1   :  { %2009 = vtanh.f32 %v932_v7  ;;  %v933_v62 = vmul.f32 0.5, %v929_v59 }
 0x2f3   :  { %2011 = vtanh.f32 %v933_v62 }
 0x2f4   :  { %2013 = vtanh.f32 %v931_v54  ;;  %v2820_v54 = vld [vmem:[#allocation3 + $0x1f0] sm:$0xff] }
 0x2f5   :  { %2015 = vtanh.f32 %v934_v3  ;;  %v2832_v3 = vld [vmem:[#allocation3 + $0x1d0] sm:$0xff] }
 0x2fe   :  { %v2010_v55 = vpop.eup %2009 }
 0x2ff   :  { %v938_v57 = vadd.f32 1.0, %v2010_v55  ;;  %v2835_v55 = vld [vmem:[#allocation3 + $0x1a8] sm:$0xff] }
 0x300   :  { %v2012_v63 = vpop.eup %2011 }
 0x301   :  { %v941_v4 = vmul.f32 0.5, %v938_v57  ;;  %v939_v32 = vadd.f32 1.0, %v2012_v63  ;;  %v2014_v50 = vpop.eup %2013  ;;  %v2838_v57 = vld [vmem:[#allocation3 + $0x1b8] sm:$0xff]  ;;  %v2841_v63 = vld [vmem:[#allocation3 + $0x1a0] sm:$0xff] }
 0x302   :  { %v2016_v23 = vpop.eup %2015 }
 0x303   :  { %v942_v6 = vmul.f32 0.5, %v939_v32  ;;  %v946_v56 = vmul.f32 %v2014_v50, %v941_v4  ;;  %v940_v41 = vadd.f32 1.0, %v2016_v23  ;;  %v2844_v4 = vld [vmem:[#allocation3 + $0x1b0] sm:$0xff]  ;;  %v2847_v32 = vld [vmem:[#allocation3 + $0x188] sm:$0xff]  ;;  %v2850_v50 = vld [vmem:[#allocation3 + $0x198] sm:$0xff] }
 0x304   :  { %v2862_v23 = vld [vmem:[#allocation3 + $0x178] sm:$0xff] }
 0x305   :  { %v945_v60 = vmul.f32 %v942_v6, %v2740_v1  ;;  %v943_v59 = vmul.f32 0.5, %v940_v41  ;;  %v2823_v1 = vld [vmem:[#allocation3 + $0x1c8] sm:$0xff]  ;;  %v2853_v6 = vld [vmem:[#allocation3 + $0x180] sm:$0xff] }
 0x306   :  { %v2865_v41 = vld [vmem:[#allocation3 + $0x160] sm:$0xff] }
 0x307   :  { %v2814_v7 = vadd.f32 %v946_v56, %v945_v60  ;;  %v2856_v56 = vld [vmem:[#allocation3 + $0x190] sm:$0xff]  ;;  %v2859_v60 = vld [vmem:[#allocation3 + $0x168] sm:$0xff] }
 0x309   :  { %2017 = vtanh.f32 %v2814_v7 }
 0x316   :  { %v2018_v0 = vpop.eup %2017 }
 0x317   :  { %v949_v62 = vmul.f32 %v2018_v0, %v943_v59  ;;  %v2868_v59 = vld [vmem:[#allocation3 + $0x170] sm:$0xff]  ;;  %v2871_v0 = vld [vmem:[#allocation3 + $0x148] sm:$0xff] }
 0x319   :  { %1020 = vmatmul.mubr.f32.vlgmr.msra.gmra.mxu0 %v949_v62  ;;  %1091 = vmatmul.mubr.f32.vlgmr.msra.gmra.mxu1 %v949_v62  ;;  %v2874_v62 = vld [vmem:[#allocation3 + $0x158] sm:$0xff] }
 0x31a   :  { %1125 = vmatpush1.msra.mxu0 %v2817_v58  ;;  %1196 = vmatpush1.msra.mxu1 %v2820_v54 }
 0x31b   :  { %1126 = vmatprep.subr.mxu0 %v2823_v1  ;;  %1197 = vmatprep.subr.mxu1 %v2826_v61 }
 0x31c   :  { %1127 = vmatpush1.msra.mxu0 %v2829_v14  ;;  %1198 = vmatpush1.msra.mxu1 %v2832_v3 }
 0x31d   :  { %1128 = vmatprep.subr.mxu0 %v2835_v55  ;;  %1199 = vmatprep.subr.mxu1 %v2838_v57 }
 0x31e   :  { %1129 = vmatpush1.msra.mxu0 %v2841_v63  ;;  %1200 = vmatpush1.msra.mxu1 %v2844_v4 }
 0x31f   :  { %1130 = vmatprep.subr.mxu0 %v2847_v32  ;;  %1201 = vmatprep.subr.mxu1 %v2850_v50 }
 0x320   :  { %1131 = vmatpush1.msra.mxu0 %v2853_v6  ;;  %1202 = vmatpush1.msra.mxu1 %v2856_v56 }
 0x321   :  { %1132 = vmatprep.subr.mxu0 %v2859_v60  ;;  %1203 = vmatprep.subr.mxu1 %v2862_v23 }
 0x322   :  { %1133 = vmatpush1.msra.mxu0 %v2865_v41  ;;  %1204 = vmatpush1.msra.mxu1 %v2868_v59 }
 0x323   :  { %1134 = vmatprep.subr.mxu0 %v2871_v0  ;;  %1205 = vmatprep.subr.mxu1 %v2874_v62 }
 0x324   :  { %1135 = vmatpush1.msra.mxu0 %v2340_v30  ;;  %1206 = vmatpush1.msra.mxu1 %v2342_v31  ;;  %v2921_v30 = vld [vmem:[#allocation3 + $0x1e8] sm:$0xff]  ;;  %v2924_v31 = vld [vmem:[#allocation3 + $0x1f8] sm:$0xff] }
 0x325   :  { %1136 = vmatprep.subr.mxu0 %v2351_v33  ;;  %1207 = vmatprep.subr.mxu1 %v2353_v34  ;;  %3473 = vst [vmem:[#allocation14_spill] sm:$0xff] %v2921_v30  ;;  %3474 = vst [vmem:[#allocation15_spill] sm:$0xff] %v2924_v31 }
 0x326   :  { %1137 = vmatpush1.msra.mxu0 %v2357_v35  ;;  %1208 = vmatpush1.msra.mxu1 %v2359_v36  ;;  %v3475_v35 = vld [vmem:[#allocation43_spill] sm:$0xff] }
 0x327   :  { %1138 = vmatprep.subr.mxu0 %v2363_v37  ;;  %1209 = vmatprep.subr.mxu1 %v2365_v38 }
 0x328   :  { %1139 = vmatpush1.msra.mxu0 %v2371_v39  ;;  %1210 = vmatpush1.msra.mxu1 %v2373_v40  ;;  %v3476_v40 = vld [vmem:[#allocation45_spill] sm:$0xff] }
 0x329   :  { %1140 = vmatprep.subr.mxu0 %v2382_v42  ;;  %1211 = vmatprep.subr.mxu1 %v2384_v43 }
 0x32a   :  { %1141 = vmatpush1.msra.mxu0 %v2388_v44  ;;  %1212 = vmatpush1.msra.mxu1 %v2390_v45  ;;  %v3477_v44 = vld [vmem:[#allocation46_spill] sm:$0xff] }
 0x32b   :  { %1142 = vmatprep.subr.mxu0 %v2394_v46  ;;  %1213 = vmatprep.subr.mxu1 %v2396_v47  ;;  %v3478_v46 = vld [vmem:[#allocation44_spill] sm:$0xff] }
 0x32c   :  { %1143 = vmatpush1.msra.mxu0 %v2402_v48  ;;  %1214 = vmatpush1.msra.mxu1 %v2404_v49 }
 0x32d   :  { %1144 = vmatprep.subr.mxu0 %v2413_v51  ;;  %1215 = vmatprep.subr.mxu1 %v2415_v52 }
 0x32e   :  { %1145 = vmatpush1.msra.mxu0 %v2419_v53  ;;  %1216 = vmatpush1.msra.mxu1 %v3419_v5 }
 0x32f   :  { %1146 = vmatprep.subr.mxu0 %v3420_v2  ;;  %1217 = vmatprep.subr.mxu1 %v3447_v8 }
 0x330   :  { %1147 = vmatpush1.msra.mxu0 %v3448_v9  ;;  %1218 = vmatpush1.msra.mxu1 %v3449_v10 }
 0x331   :  { %1148 = vmatprep.subr.mxu0 %v3450_v11  ;;  %1219 = vmatprep.subr.mxu1 %v3451_v12 }
 0x332   :  { %1149 = vmatpush1.msra.mxu0 %v3452_v13  ;;  %1220 = vmatpush1.msra.mxu1 %v3453_v15 }
 0x333   :  { %1150 = vmatprep.subr.mxu0 %v3454_v16  ;;  %1221 = vmatprep.subr.mxu1 %v3455_v17 }
 0x334   :  { %1151 = vmatpush1.msra.mxu0 %v3456_v18  ;;  %1222 = vmatpush1.msra.mxu1 %v3457_v19  ;;  %v2955_v18 = vld [vmem:[#allocation3 + $0x140] sm:$0xff]  ;;  %v2958_v19 = vld [vmem:[#allocation3 + $0x150] sm:$0xff] }
 0x335   :  { %1152 = vmatprep.subr.mxu0 %v3458_v20  ;;  %1223 = vmatprep.subr.mxu1 %v3459_v21  ;;  %v2961_v20 = vld [vmem:[#allocation3 + $0x128] sm:$0xff]  ;;  %v2964_v21 = vld [vmem:[#allocation3 + $0x138] sm:$0xff] }
 0x336   :  { %1153 = vmatpush1.msra.mxu0 %v3460_v22  ;;  %1224 = vmatpush1.msra.mxu1 %v3461_v24  ;;  %v2967_v22 = vld [vmem:[#allocation3 + $0x120] sm:$0xff]  ;;  %v2970_v24 = vld [vmem:[#allocation3 + $0x130] sm:$0xff] }
 0x337   :  { %1154 = vmatprep.subr.mxu0 %v3462_v25  ;;  %1225 = vmatprep.subr.mxu1 %v3463_v26  ;;  %v2973_v25 = vld [vmem:[#allocation3 + $0x108] sm:$0xff]  ;;  %v2976_v26 = vld [vmem:[#allocation3 + $0x118] sm:$0xff] }
 0x338   :  { %1155 = vmatpush1.msra.mxu0 %v3464_v27  ;;  %1188 = vmatprep.mubr.f32.mxu0 %v3465_v28  ;;  %v2979_v27 = vld [vmem:[#allocation3 + $0x100] sm:$0xff] }
 0x339   :  { %1226 = vmatpush1.msra.mxu1 %v3466_v29  ;;  %1259 = vmatprep.mubr.f32.mxu1 %v3465_v28  ;;  %v2982_v29 = vld [vmem:[#allocation3 + $0x110] sm:$0xff] }
 0x33a   :  { %1293 = vmatprep.subr.mxu0 %v2921_v30  ;;  %1364 = vmatprep.subr.mxu1 %v2924_v31 }
 0x3d9   :  { %v1021_v33 = vpop.f32.mrf.mxu0  ;;  %v1092_v34 = vpop.f32.mrf.mxu1 }
 0x3da   :  { %v1097_v36 = vadd.f32 %v1021_v33, %v3475_v35  ;;  %v1099_v47 = vadd.f32 %v1092_v34, %v3478_v46  ;;  %v2988_v33 = vld [vmem:[#allocation3 + $0xf8] sm:$0xff]  ;;  %v2991_v34 = vld [vmem:[#allocation3 + $0xe0] sm:$0xff]  ;;  %v2994_v35 = vld [vmem:[#allocation3 + $0xf0] sm:$0xff] }
 0x3db   :  { %v1023_v37 = vpop.f32.mrf.mxu0  ;;  %v1094_v38 = vpop.f32.mrf.mxu1  ;;  %v3024_v46 = vld [vmem:[#allocation3 + $0x98] sm:$0xff] }
 0x3dc   :  { %v1101_v39 = vmul.f32 0.5, %v1097_v36  ;;  %v1098_v42 = vadd.f32 %v1023_v37, %v3476_v40  ;;  %v1100_v45 = vadd.f32 %v1094_v38, %v3477_v44  ;;  %v1103_v48 = vmul.f32 0.5, %v1099_v47  ;;  %v2997_v36 = vld [vmem:[#allocation3 + $0xc8] sm:$0xff]  ;;  %v3000_v37 = vld [vmem:[#allocation3 + $0xd8] sm:$0xff]  ;;  %v3003_v38 = vld [vmem:[#allocation3 + $0xc0] sm:$0xff]  ;;  %3479 = vst [vmem:[#allocation35_spill] sm:$0xff] %v3024_v46 }
 0x3dd   :  { %v3009_v40 = vld [vmem:[#allocation3 + $0xa8] sm:$0xff]  ;;  %v3018_v44 = vld [vmem:[#allocation3 + $0xb0] sm:$0xff]  ;;  %v3027_v47 = vld [vmem:[#allocation3 + $0x80] sm:$0xff] }
 0x3de   :  { %2019 = vtanh.f32 %v1101_v39  ;;  %v1102_v43 = vmul.f32 0.5, %v1098_v42  ;;  %v3006_v39 = vld [vmem:[#allocation3 + $0xd0] sm:$0xff]  ;;  %v3012_v42 = vld [vmem:[#allocation3 + $0xb8] sm:$0xff]  ;;  %3480 = vst [vmem:[#allocation37_spill] sm:$0xff] %v3027_v47 }
 0x3e0   :  { %2021 = vtanh.f32 %v1102_v43  ;;  %v3015_v43 = vld [vmem:[#allocation3 + $0xa0] sm:$0xff] }
 0x3e1   :  { %2023 = vtanh.f32 %v1100_v45  ;;  %v3021_v45 = vld [vmem:[#allocation3 + $0x88] sm:$0xff] }
 0x3e2   :  { %2025 = vtanh.f32 %v1103_v48  ;;  %v3030_v48 = vld [vmem:[#allocation3 + $0x90] sm:$0xff] }
 0x3e3   :  { %3481 = vst [vmem:[#allocation38_spill] sm:$0xff] %v3030_v48 }
 0x3eb   :  { %v2020_v49 = vpop.eup %2019 }
 0x3ec   :  { %v1107_v51 = vadd.f32 1.0, %v2020_v49  ;;  %v3033_v49 = vld [vmem:[#allocation3 + $0x68] sm:$0xff] }
 0x3ed   :  { %v2022_v52 = vpop.eup %2021  ;;  %3482 = vst [vmem:[#allocation36_spill] sm:$0xff] %v3033_v49 }
 0x3ee   :  { %v1110_v53 = vmul.f32 0.5, %v1107_v51  ;;  %v1108_v5 = vadd.f32 1.0, %v2022_v52  ;;  %v2024_v2 = vpop.eup %2023  ;;  %v3036_v51 = vld [vmem:[#allocation3 + $0x78] sm:$0xff]  ;;  %v3039_v52 = vld [vmem:[#allocation3 + $0x60] sm:$0xff] }
 0x3ef   :  { %v2026_v12 = vpop.eup %2025  ;;  %3483 = vst [vmem:[#allocation16_spill] sm:$0xff] %v3036_v51  ;;  %3484 = vst [vmem:[#allocation17_spill] sm:$0xff] %v3039_v52 }
 0x3f0   :  { %v1111_v8 = vmul.f32 0.5, %v1108_v5  ;;  %v1115_v9 = vmul.f32 %v2024_v2, %v1110_v53  ;;  %v1109_v13 = vadd.f32 1.0, %v2026_v12  ;;  %v3042_v53 = vld [vmem:[#allocation3 + $0x70] sm:$0xff]  ;;  %v3045_v5 = vld [vmem:[#allocation3 + $0x48] sm:$0xff]  ;;  %v3048_v2 = vld [vmem:[#allocation3 + $0x58] sm:$0xff] }
 0x3f1   :  { %3485 = vst [vmem:[#allocation18_spill] sm:$0xff] %v3042_v53  ;;  %3486 = vst [vmem:[#allocation19_spill] sm:$0xff] %v3045_v5  ;;  %v3060_v12 = vld [vmem:[#allocation3 + $0x38] sm:$0xff] }
 0x3f2   :  { %v1114_v10 = vmul.f32 %v1111_v8, %v2814_v7  ;;  %v1112_v15 = vmul.f32 0.5, %v1109_v13  ;;  %v2985_v7 = vld [vmem:[#allocation3 + $0xe8] sm:$0xff]  ;;  %3487 = vst [vmem:[#allocation20_spill] sm:$0xff] %v3048_v2  ;;  %v3051_v8 = vld [vmem:[#allocation3 + $0x40] sm:$0xff]  ;;  %3491 = vst [vmem:[#allocation24_spill] sm:$0xff] %v3060_v12 }
 0x3f3   :  { %3488 = vst [vmem:[#allocation21_spill] sm:$0xff] %v3051_v8  ;;  %v3063_v13 = vld [vmem:[#allocation3 + $0x20] sm:$0xff] }
 0x3f4   :  { %v2932_v11 = vadd.f32 %v1115_v9, %v1114_v10  ;;  %v3054_v9 = vld [vmem:[#allocation3 + $0x50] sm:$0xff]  ;;  %v3057_v10 = vld [vmem:[#allocation3 + $0x28] sm:$0xff]  ;;  %3492 = vst [vmem:[#allocation25_spill] sm:$0xff] %v3063_v13 }
 0x3f5   :  { %3489 = vst [vmem:[#allocation22_spill] sm:$0xff] %v3054_v9  ;;  %3490 = vst [vmem:[#allocation23_spill] sm:$0xff] %v3057_v10 }
 0x3f6   :  { %2027 = vtanh.f32 %v2932_v11 }
 0x403   :  { %v2028_v16 = vpop.eup %2027 }
 0x404   :  { %v1118_v17 = vmul.f32 %v2028_v16, %v1112_v15  ;;  %v3066_v15 = vld [vmem:[#allocation3 + $0x30] sm:$0xff]  ;;  %v3069_v16 = vld [vmem:[#allocation3 + $0x8] sm:$0xff] }
 0x405   :  { %3493 = vst [vmem:[#allocation26_spill] sm:$0xff] %v3066_v15  ;;  %3494 = vst [vmem:[#allocation27_spill] sm:$0xff] %v3069_v16 }
 0x406   :  { %1189 = vmatmul.mubr.f32.vlgmr.msra.gmra.mxu0 %v1118_v17  ;;  %1260 = vmatmul.mubr.f32.vlgmr.msra.gmra.mxu1 %v1118_v17  ;;  %v3072_v17 = vld [vmem:[#allocation3 + $0x18] sm:$0xff] }
 0x407   :  { %1294 = vmatpush1.msra.mxu0 %v2817_v58  ;;  %1365 = vmatpush1.msra.mxu1 %v2820_v54  ;;  %3495 = vst [vmem:[#allocation28_spill] sm:$0xff] %v3072_v17 }
 0x408   :  { %1295 = vmatprep.subr.mxu0 %v2823_v1  ;;  %1366 = vmatprep.subr.mxu1 %v2826_v61 }
 0x409   :  { %1296 = vmatpush1.msra.mxu0 %v2829_v14  ;;  %1367 = vmatpush1.msra.mxu1 %v2832_v3 }
 0x40a   :  { %1297 = vmatprep.subr.mxu0 %v2835_v55  ;;  %1368 = vmatprep.subr.mxu1 %v2838_v57 }
 0x40b   :  { %1298 = vmatpush1.msra.mxu0 %v2841_v63  ;;  %1369 = vmatpush1.msra.mxu1 %v2844_v4 }
 0x40c   :  { %1299 = vmatprep.subr.mxu0 %v2847_v32  ;;  %1370 = vmatprep.subr.mxu1 %v2850_v50 }
 0x40d   :  { %1300 = vmatpush1.msra.mxu0 %v2853_v6  ;;  %1371 = vmatpush1.msra.mxu1 %v2856_v56 }
 0x40e   :  { %1301 = vmatprep.subr.mxu0 %v2859_v60  ;;  %1372 = vmatprep.subr.mxu1 %v2862_v23 }
 0x40f   :  { %1302 = vmatpush1.msra.mxu0 %v2865_v41  ;;  %1373 = vmatpush1.msra.mxu1 %v2868_v59 }
 0x410   :  { %1303 = vmatprep.subr.mxu0 %v2871_v0  ;;  %1374 = vmatprep.subr.mxu1 %v2874_v62 }
 0x411   :  { %1304 = vmatpush1.msra.mxu0 %v2955_v18  ;;  %1375 = vmatpush1.msra.mxu1 %v2958_v19 }
 0x412   :  { %1305 = vmatprep.subr.mxu0 %v2961_v20  ;;  %1376 = vmatprep.subr.mxu1 %v2964_v21 }
 0x413   :  { %1306 = vmatpush1.msra.mxu0 %v2967_v22  ;;  %1377 = vmatpush1.msra.mxu1 %v2970_v24 }
 0x414   :  { %1307 = vmatprep.subr.mxu0 %v2973_v25  ;;  %1378 = vmatprep.subr.mxu1 %v2976_v26 }
 0x415   :  { %1308 = vmatpush1.msra.mxu0 %v2979_v27  ;;  %1379 = vmatpush1.msra.mxu1 %v2982_v29 }
 0x416   :  { %1309 = vmatprep.subr.mxu0 %v2985_v7  ;;  %1380 = vmatprep.subr.mxu1 %v2988_v33 }
 0x417   :  { %1310 = vmatpush1.msra.mxu0 %v2991_v34  ;;  %1381 = vmatpush1.msra.mxu1 %v2994_v35 }
 0x418   :  { %1311 = vmatprep.subr.mxu0 %v2997_v36  ;;  %1382 = vmatprep.subr.mxu1 %v3000_v37 }
 0x419   :  { %1312 = vmatpush1.msra.mxu0 %v3003_v38  ;;  %1383 = vmatpush1.msra.mxu1 %v3006_v39 }
 0x41a   :  { %1313 = vmatprep.subr.mxu0 %v3009_v40  ;;  %1384 = vmatprep.subr.mxu1 %v3012_v42 }
 0x41b   :  { %1314 = vmatpush1.msra.mxu0 %v3015_v43  ;;  %1385 = vmatpush1.msra.mxu1 %v3018_v44 }
 0x41c   :  { %1315 = vmatprep.subr.mxu0 %v3021_v45  ;;  %1386 = vmatprep.subr.mxu1 %v3024_v46 }
 0x41d   :  { %1316 = vmatpush1.msra.mxu0 %v3027_v47  ;;  %1387 = vmatpush1.msra.mxu1 %v3030_v48 }
 0x41e   :  { %1317 = vmatprep.subr.mxu0 %v3033_v49  ;;  %1388 = vmatprep.subr.mxu1 %v3036_v51 }
 0x41f   :  { %1318 = vmatpush1.msra.mxu0 %v3039_v52  ;;  %1389 = vmatpush1.msra.mxu1 %v3042_v53  ;;  %v3500_v52 = vld [vmem:[#allocation50_spill] sm:$0xff] }
 0x420   :  { %1319 = vmatprep.subr.mxu0 %v3045_v5  ;;  %1390 = vmatprep.subr.mxu1 %v3048_v2 }
 0x421   :  { %1320 = vmatpush1.msra.mxu0 %v3051_v8  ;;  %1391 = vmatpush1.msra.mxu1 %v3054_v9 }
 0x422   :  { %1321 = vmatprep.subr.mxu0 %v3057_v10  ;;  %1392 = vmatprep.subr.mxu1 %v3060_v12  ;;  %v3075_v10 = vld [vmem:[#allocation3] sm:$0xff]  ;;  %v3079_v12 = vld [vmem:[#allocation3 + $0x10] sm:$0xff] }
 0x423   :  { %1322 = vmatpush1.msra.mxu0 %v3063_v13  ;;  %1393 = vmatpush1.msra.mxu1 %v3066_v15  ;;  %3496 = vst [vmem:[#allocation29_spill] sm:$0xff] %v3075_v10  ;;  %3497 = vst [vmem:[#allocation30_spill] sm:$0xff] %v3079_v12  ;;  %v3498_v13 = vld [vmem:[#allocation47_spill] sm:$0xff] }
 0x424   :  { %1323 = vmatprep.subr.mxu0 %v3069_v16  ;;  %1394 = vmatprep.subr.mxu1 %v3072_v17 }
 0x425   :  { %1324 = vmatpush1.msra.mxu0 %v3075_v10  ;;  %1357 = vmatprep.mubr.f32.mxu0 %v3465_v28  ;;  %v3499_v10 = vld [vmem:[#allocation49_spill] sm:$0xff] }
 0x426   :  { %1395 = vmatpush1.msra.mxu1 %v3079_v12  ;;  %1428 = vmatprep.mubr.f32.mxu1 %v3465_v28  ;;  %v3501_v12 = vld [vmem:[#allocation48_spill] sm:$0xff] }
 0x427   :  { %1462 = vmatprep.subr.mxu0 %v2921_v30  ;;  %1533 = vmatprep.subr.mxu1 %v2924_v31 }
 0x4c6   :  { %v1190_v16 = vpop.f32.mrf.mxu0  ;;  %v1261_v15 = vpop.f32.mrf.mxu1 }
 0x4c7   :  { %v1266_v17 = vadd.f32 %v1190_v16, %v3498_v13  ;;  %v1268_v28 = vadd.f32 %v1261_v15, %v3501_v12  ;;  %v3511_v12 = vld [vmem:[#allocation21_spill] sm:$0xff]  ;;  %v3512_v15 = vld [vmem:[#allocation22_spill] sm:$0xff] }
 0x4c8   :  { %v1192_v9 = vpop.f32.mrf.mxu0  ;;  %v1263_v8 = vpop.f32.mrf.mxu1 }
 0x4c9   :  { %v1270_v2 = vmul.f32 0.5, %v1266_v17  ;;  %v1267_v5 = vadd.f32 %v1192_v9, %v3499_v10  ;;  %v1269_v51 = vadd.f32 %v1263_v8, %v3500_v52  ;;  %v1272_v30 = vmul.f32 0.5, %v1268_v28  ;;  %v3509_v8 = vld [vmem:[#allocation19_spill] sm:$0xff]  ;;  %v3510_v10 = vld [vmem:[#allocation20_spill] sm:$0xff] }
 0x4cb   :  { %2029 = vtanh.f32 %v1270_v2  ;;  %v1271_v53 = vmul.f32 0.5, %v1267_v5 }
 0x4cd   :  { %2031 = vtanh.f32 %v1271_v53 }
 0x4ce   :  { %2033 = vtanh.f32 %v1269_v51 }
 0x4cf   :  { %2035 = vtanh.f32 %v1272_v30  ;;  %v3502_v30 = vld [vmem:[#allocation35_spill] sm:$0xff] }
 0x4d8   :  { %v2030_v49 = vpop.eup %2029 }
 0x4d9   :  { %v1276_v31 = vadd.f32 1.0, %v2030_v49  ;;  %v3508_v49 = vld [vmem:[#allocation18_spill] sm:$0xff] }
 0x4da   :  { %v2032_v48 = vpop.eup %2031 }
 0x4db   :  { %v1279_v47 = vmul.f32 0.5, %v1276_v31  ;;  %v1277_v13 = vadd.f32 1.0, %v2032_v48  ;;  %v2034_v16 = vpop.eup %2033  ;;  %v3503_v31 = vld [vmem:[#allocation37_spill] sm:$0xff] }
 0x4dc   :  { %v2036_v52 = vpop.eup %2035  ;;  %v3507_v48 = vld [vmem:[#allocation17_spill] sm:$0xff] }
 0x4dd   :  { %v1280_v46 = vmul.f32 0.5, %v1277_v13  ;;  %v1284_v17 = vmul.f32 %v2034_v16, %v1279_v47  ;;  %v1278_v51 = vadd.f32 1.0, %v2036_v52  ;;  %v3506_v47 = vld [vmem:[#allocation16_spill] sm:$0xff]  ;;  %v3513_v13 = vld [vmem:[#allocation23_spill] sm:$0xff] }
 0x4de   :  { %v3514_v16 = vld [vmem:[#allocation24_spill] sm:$0xff]  ;;  %v3517_v52 = vld [vmem:[#allocation27_spill] sm:$0xff] }
 0x4df   :  { %v1283_v9 = vmul.f32 %v1280_v46, %v2932_v11  ;;  %v1281_v53 = vmul.f32 0.5, %v1278_v51  ;;  %v3504_v11 = vld [vmem:[#allocation38_spill] sm:$0xff]  ;;  %v3505_v46 = vld [vmem:[#allocation36_spill] sm:$0xff] }
 0x4e0   :  { %v3518_v51 = vld [vmem:[#allocation28_spill] sm:$0xff] }
 0x4e1   :  { %v3090_v2 = vadd.f32 %v1284_v17, %v1283_v9  ;;  %v3515_v17 = vld [vmem:[#allocation25_spill] sm:$0xff]  ;;  %v3516_v9 = vld [vmem:[#allocation26_spill] sm:$0xff] }
 0x4e3   :  { %2037 = vtanh.f32 %v3090_v2 }
 0x4f0   :  { %v2038_v5 = vpop.eup %2037 }
 0x4f1   :  { %v1287_v28 = vmul.f32 %v2038_v5, %v1281_v53  ;;  %v3519_v53 = vld [vmem:[#allocation29_spill] sm:$0xff]  ;;  %v3520_v5 = vmov 0.0  }
 0x4f3   :  { %1358 = vmatmul.mubr.f32.vlgmr.msra.gmra.mxu0 %v1287_v28  ;;  %1429 = vmatmul.mubr.f32.vlgmr.msra.gmra.mxu1 %v1287_v28  ;;  %v3521_v28 = vld [vmem:[#allocation30_spill] sm:$0xff] }
 0x4f4   :  { %1463 = vmatpush1.msra.mxu0 %v2817_v58  ;;  %1534 = vmatpush1.msra.mxu1 %v2820_v54 }
 0x4f5   :  { %1464 = vmatprep.subr.mxu0 %v2823_v1  ;;  %1535 = vmatprep.subr.mxu1 %v2826_v61 }
 0x4f6   :  { %1465 = vmatpush1.msra.mxu0 %v2829_v14  ;;  %1536 = vmatpush1.msra.mxu1 %v2832_v3 }
 0x4f7   :  { %1466 = vmatprep.subr.mxu0 %v2835_v55  ;;  %1537 = vmatprep.subr.mxu1 %v2838_v57 }
 0x4f8   :  { %1467 = vmatpush1.msra.mxu0 %v2841_v63  ;;  %1538 = vmatpush1.msra.mxu1 %v2844_v4 }
 0x4f9   :  { %1468 = vmatprep.subr.mxu0 %v2847_v32  ;;  %1539 = vmatprep.subr.mxu1 %v2850_v50 }
 0x4fa   :  { %1469 = vmatpush1.msra.mxu0 %v2853_v6  ;;  %1540 = vmatpush1.msra.mxu1 %v2856_v56 }
 0x4fb   :  { %1470 = vmatprep.subr.mxu0 %v2859_v60  ;;  %1541 = vmatprep.subr.mxu1 %v2862_v23 }
 0x4fc   :  { %1471 = vmatpush1.msra.mxu0 %v2865_v41  ;;  %1542 = vmatpush1.msra.mxu1 %v2868_v59 }
 0x4fd   :  { %1472 = vmatprep.subr.mxu0 %v2871_v0  ;;  %1543 = vmatprep.subr.mxu1 %v2874_v62 }
 0x4fe   :  { %1473 = vmatpush1.msra.mxu0 %v2955_v18  ;;  %1544 = vmatpush1.msra.mxu1 %v2958_v19 }
 0x4ff   :  { %1474 = vmatprep.subr.mxu0 %v2961_v20  ;;  %1545 = vmatprep.subr.mxu1 %v2964_v21 }
 0x500   :  { %1475 = vmatpush1.msra.mxu0 %v2967_v22  ;;  %1546 = vmatpush1.msra.mxu1 %v2970_v24 }
 0x501   :  { %1476 = vmatprep.subr.mxu0 %v2973_v25  ;;  %1547 = vmatprep.subr.mxu1 %v2976_v26 }
 0x502   :  { %1477 = vmatpush1.msra.mxu0 %v2979_v27  ;;  %1548 = vmatpush1.msra.mxu1 %v2982_v29 }
 0x503   :  { %1478 = vmatprep.subr.mxu0 %v2985_v7  ;;  %1549 = vmatprep.subr.mxu1 %v2988_v33 }
 0x504   :  { %1479 = vmatpush1.msra.mxu0 %v2991_v34  ;;  %1550 = vmatpush1.msra.mxu1 %v2994_v35 }
 0x505   :  { %1480 = vmatprep.subr.mxu0 %v2997_v36  ;;  %1551 = vmatprep.subr.mxu1 %v3000_v37 }
 0x506   :  { %1481 = vmatpush1.msra.mxu0 %v3003_v38  ;;  %1552 = vmatpush1.msra.mxu1 %v3006_v39 }
 0x507   :  { %1482 = vmatprep.subr.mxu0 %v3009_v40  ;;  %1553 = vmatprep.subr.mxu1 %v3012_v42 }
 0x508   :  { %1483 = vmatpush1.msra.mxu0 %v3015_v43  ;;  %1554 = vmatpush1.msra.mxu1 %v3018_v44 }
 0x509   :  { %1484 = vmatprep.subr.mxu0 %v3021_v45  ;;  %1555 = vmatprep.subr.mxu1 %v3502_v30 }
 0x50a   :  { %1485 = vmatpush1.msra.mxu0 %v3503_v31  ;;  %1556 = vmatpush1.msra.mxu1 %v3504_v11 }
 0x50b   :  { %1486 = vmatprep.subr.mxu0 %v3505_v46  ;;  %1557 = vmatprep.subr.mxu1 %v3506_v47 }
 0x50c   :  { %1487 = vmatpush1.msra.mxu0 %v3507_v48  ;;  %1558 = vmatpush1.msra.mxu1 %v3508_v49  ;;  %v3526_v48 = vld [vmem:[#allocation54_spill] sm:$0xff] }
 0x50d   :  { %1488 = vmatprep.subr.mxu0 %v3509_v8  ;;  %1559 = vmatprep.subr.mxu1 %v3510_v10 }
 0x50e   :  { %1489 = vmatpush1.msra.mxu0 %v3511_v12  ;;  %1560 = vmatpush1.msra.mxu1 %v3512_v15  ;;  %v3522_v15 = vld [vmem:[#allocation14_spill] sm:$0xff]  ;;  %v3524_v12 = vld [vmem:[#allocation51_spill] sm:$0xff] }
 0x50f   :  { %1490 = vmatprep.subr.mxu0 %v3513_v13  ;;  %1561 = vmatprep.subr.mxu1 %v3514_v16  ;;  %v3523_v13 = vld [vmem:[#allocation15_spill] sm:$0xff] }
 0x510   :  { %1491 = vmatpush1.msra.mxu0 %v3515_v17  ;;  %1562 = vmatpush1.msra.mxu1 %v3516_v9 }
 0x511   :  { %1492 = vmatprep.subr.mxu0 %v3517_v52  ;;  %1563 = vmatprep.subr.mxu1 %v3518_v51  ;;  %v3525_v51 = vld [vmem:[#allocation53_spill] sm:$0xff] }
 0x512   :  { %1493 = vmatpush1.msra.mxu0 %v3519_v53  ;;  %1526 = vmatprep.mubr.f32.mxu0 %v3520_v5 }
 0x513   :  { %1564 = vmatpush1.msra.mxu1 %v3521_v28  ;;  %1597 = vmatprep.mubr.f32.mxu1 %v3520_v5  ;;  %v3527_v28 = vld [vmem:[#allocation52_spill] sm:$0xff] }
 0x514   :  { %1631 = vmatprep.subr.mxu0 %v3522_v15  ;;  %1702 = vmatprep.subr.mxu1 %v3523_v13 }
 0x5b3   :  { %v1359_v16 = vpop.f32.mrf.mxu0  ;;  %v1430_v17 = vpop.f32.mrf.mxu1 }
 0x5b4   :  { %v1435_v9 = vadd.f32 %v1359_v16, %v3524_v12  ;;  %v1437_v5 = vadd.f32 %v1430_v17, %v3527_v28  ;;  %v1809_v28 = vld [vmem:[#allocation6 + $0x70] sm:$0xff] }
 0x5b5   :  { %v1361_v10 = vpop.f32.mrf.mxu0  ;;  %v1432_v52 = vpop.f32.mrf.mxu1 }
 0x5b6   :  { %v1439_v8 = vmul.f32 0.5, %v1435_v9  ;;  %v1436_v49 = vadd.f32 %v1361_v10, %v3525_v51  ;;  %v1438_v47 = vadd.f32 %v1432_v52, %v3526_v48  ;;  %v1441_v15 = vmul.f32 0.5, %v1437_v5  ;;  %v1810_v5 = vld [vmem:[#allocation6 + $0x78] sm:$0xff] }
 0x5b8   :  { %2039 = vtanh.f32 %v1439_v8  ;;  %v1440_v53 = vmul.f32 0.5, %v1436_v49 }
 0x5ba   :  { %2041 = vtanh.f32 %v1440_v53 }
 0x5bb   :  { %2043 = vtanh.f32 %v1438_v47 }
 0x5bc   :  { %2045 = vtanh.f32 %v1441_v15  ;;  %v1808_v15 = vld [vmem:[#allocation6 + $0x68] sm:$0xff] }
 0x5c5   :  { %v2040_v46 = vpop.eup %2039 }
 0x5c6   :  { %v1445_v13 = vadd.f32 1.0, %v2040_v46 }
 0x5c7   :  { %v2042_v11 = vpop.eup %2041 }
 0x5c8   :  { %v1448_v31 = vmul.f32 0.5, %v1445_v13  ;;  %v1446_v12 = vadd.f32 1.0, %v2042_v11  ;;  %v2044_v16 = vpop.eup %2043  ;;  %v1807_v13 = vld [vmem:[#allocation6 + $0x60] sm:$0xff] }
 0x5c9   :  { %v2046_v48 = vpop.eup %2045 }
 0x5ca   :  { %v1449_v30 = vmul.f32 0.5, %v1446_v12  ;;  %v1453_v9 = vmul.f32 %v2044_v16, %v1448_v31  ;;  %v1447_v47 = vadd.f32 1.0, %v2046_v48  ;;  %v1806_v12 = vld [vmem:[#allocation6 + $0x58] sm:$0xff]  ;;  %v1805_v16 = vld [vmem:[#allocation6 + $0x50] sm:$0xff] }
 0x5cb   :  { %v1801_v48 = vld [vmem:[#allocation6 + $0x30] sm:$0xff] }
 0x5cc   :  { %v1452_v10 = vmul.f32 %v1449_v30, %v3090_v2  ;;  %v1450_v49 = vmul.f32 0.5, %v1447_v47  ;;  %v1800_v47 = vld [vmem:[#allocation6 + $0x28] sm:$0xff] }
 0x5ce   :  { %v3164_v8 = vadd.f32 %v1453_v9, %v1452_v10  ;;  %v1804_v9 = vld [vmem:[#allocation6 + $0x48] sm:$0xff]  ;;  %v1803_v10 = vld [vmem:[#allocation6 + $0x40] sm:$0xff] }
 0x5d0   :  { %2047 = vtanh.f32 %v3164_v8 }
 0x5dd   :  { %v2048_v17 = vpop.eup %2047 }
 0x5de   :  { %v1456_v52 = vmul.f32 %v2048_v17, %v1450_v49  ;;  %v1799_v49 = vld [vmem:[#allocation6 + $0x20] sm:$0xff]  ;;  %v1798_v17 = vld [vmem:[#allocation6 + $0x18] sm:$0xff] }
 0x5e0   :  { %1527 = vmatmul.mubr.f32.vlgmr.msra.gmra.mxu0 %v1456_v52  ;;  %1598 = vmatmul.mubr.f32.vlgmr.msra.gmra.mxu1 %v1456_v52  ;;  %v1797_v52 = vld [vmem:[#allocation6 + $0x10] sm:$0xff] }
 0x5e1   :  { %1632 = vmatpush1.msra.mxu0 %v2817_v58  ;;  %1703 = vmatpush1.msra.mxu1 %v2820_v54  ;;  %v3528_v58 = vld [vmem:[#allocation35_spill] sm:$0xff]  ;;  %v3529_v54 = vld [vmem:[#allocation37_spill] sm:$0xff] }
 0x5e2   :  { %1633 = vmatprep.subr.mxu0 %v2823_v1  ;;  %1704 = vmatprep.subr.mxu1 %v2826_v61  ;;  %v3530_v1 = vld [vmem:[#allocation38_spill] sm:$0xff]  ;;  %v3531_v61 = vld [vmem:[#allocation36_spill] sm:$0xff] }
 0x5e3   :  { %1634 = vmatpush1.msra.mxu0 %v2829_v14  ;;  %1705 = vmatpush1.msra.mxu1 %v2832_v3  ;;  %v3532_v14 = vld [vmem:[#allocation16_spill] sm:$0xff]  ;;  %v3533_v3 = vld [vmem:[#allocation17_spill] sm:$0xff] }
 0x5e4   :  { %1635 = vmatprep.subr.mxu0 %v2835_v55  ;;  %1706 = vmatprep.subr.mxu1 %v2838_v57  ;;  %v3534_v55 = vld [vmem:[#allocation18_spill] sm:$0xff]  ;;  %v3535_v57 = vld [vmem:[#allocation19_spill] sm:$0xff] }
 0x5e5   :  { %1636 = vmatpush1.msra.mxu0 %v2841_v63  ;;  %1707 = vmatpush1.msra.mxu1 %v2844_v4  ;;  %v3536_v63 = vld [vmem:[#allocation20_spill] sm:$0xff]  ;;  %v3537_v4 = vld [vmem:[#allocation21_spill] sm:$0xff] }
 0x5e6   :  { %1637 = vmatprep.subr.mxu0 %v2847_v32  ;;  %1708 = vmatprep.subr.mxu1 %v2850_v50  ;;  %v3538_v32 = vld [vmem:[#allocation22_spill] sm:$0xff]  ;;  %v3539_v50 = vld [vmem:[#allocation23_spill] sm:$0xff] }
 0x5e7   :  { %1638 = vmatpush1.msra.mxu0 %v2853_v6  ;;  %1709 = vmatpush1.msra.mxu1 %v2856_v56  ;;  %v3540_v6 = vld [vmem:[#allocation24_spill] sm:$0xff]  ;;  %v3541_v56 = vld [vmem:[#allocation25_spill] sm:$0xff] }
 0x5e8   :  { %1639 = vmatprep.subr.mxu0 %v2859_v60  ;;  %1710 = vmatprep.subr.mxu1 %v2862_v23  ;;  %v3542_v60 = vld [vmem:[#allocation26_spill] sm:$0xff]  ;;  %v3543_v23 = vld [vmem:[#allocation27_spill] sm:$0xff] }
 0x5e9   :  { %1640 = vmatpush1.msra.mxu0 %v2865_v41  ;;  %1711 = vmatpush1.msra.mxu1 %v2868_v59  ;;  %v3544_v41 = vld [vmem:[#allocation28_spill] sm:$0xff]  ;;  %v3545_v59 = vld [vmem:[#allocation29_spill] sm:$0xff] }
 0x5ea   :  { %1641 = vmatprep.subr.mxu0 %v2871_v0  ;;  %1712 = vmatprep.subr.mxu1 %v2874_v62  ;;  %v3546_v0 = vmov 0.0   ;;  %v3547_v62 = vld [vmem:[#allocation30_spill] sm:$0xff] }
 0x5eb   :  { %1642 = vmatpush1.msra.mxu0 %v2955_v18  ;;  %1713 = vmatpush1.msra.mxu1 %v2958_v19 }
 0x5ec   :  { %1643 = vmatprep.subr.mxu0 %v2961_v20  ;;  %1714 = vmatprep.subr.mxu1 %v2964_v21  ;;  %v3548_v20 = vld [vmem:[#allocation55_spill] sm:$0xff] }
 0x5ed   :  { %1644 = vmatpush1.msra.mxu0 %v2967_v22  ;;  %1715 = vmatpush1.msra.mxu1 %v2970_v24 }
 0x5ee   :  { %1645 = vmatprep.subr.mxu0 %v2973_v25  ;;  %1716 = vmatprep.subr.mxu1 %v2976_v26  ;;  %v3549_v26 = vld [vmem:[#allocation57_spill] sm:$0xff] }
 0x5ef   :  { %1646 = vmatpush1.msra.mxu0 %v2979_v27  ;;  %1717 = vmatpush1.msra.mxu1 %v2982_v29 }
 0x5f0   :  { %1647 = vmatprep.subr.mxu0 %v2985_v7  ;;  %1718 = vmatprep.subr.mxu1 %v2988_v33  ;;  %v3550_v7 = vld [vmem:[#allocation58_spill] sm:$0xff] }
 0x5f1   :  { %1648 = vmatpush1.msra.mxu0 %v2991_v34  ;;  %1719 = vmatpush1.msra.mxu1 %v2994_v35  ;;  %v3551_v34 = vld [vmem:[#allocation56_spill] sm:$0xff] }
 0x5f2   :  { %1649 = vmatprep.subr.mxu0 %v2997_v36  ;;  %1720 = vmatprep.subr.mxu1 %v3000_v37 }
 0x5f3   :  { %1650 = vmatpush1.msra.mxu0 %v3003_v38  ;;  %1721 = vmatpush1.msra.mxu1 %v3006_v39 }
 0x5f4   :  { %1651 = vmatprep.subr.mxu0 %v3009_v40  ;;  %1722 = vmatprep.subr.mxu1 %v3012_v42 }
 0x5f5   :  { %1652 = vmatpush1.msra.mxu0 %v3015_v43  ;;  %1723 = vmatpush1.msra.mxu1 %v3018_v44 }
 0x5f6   :  { %1653 = vmatprep.subr.mxu0 %v3021_v45  ;;  %1724 = vmatprep.subr.mxu1 %v3528_v58  ;;  %v1796_v58 = vld [vmem:[#allocation6 + $0x8] sm:$0xff] }
 0x5f7   :  { %1654 = vmatpush1.msra.mxu0 %v3529_v54  ;;  %1725 = vmatpush1.msra.mxu1 %v3530_v1  ;;  %v1795_v54 = vld [vmem:[#allocation6] sm:$0xff] }
 0x5f8   :  { %1655 = vmatprep.subr.mxu0 %v3531_v61  ;;  %1726 = vmatprep.subr.mxu1 %v3532_v14  ;;  %v3552_v14 = vld [vmem:[#allocation59_spill] sm:$0xff] }
 0x5f9   :  { %1656 = vmatpush1.msra.mxu0 %v3533_v3  ;;  %1727 = vmatpush1.msra.mxu1 %v3534_v55 }
 0x5fa   :  { %1657 = vmatprep.subr.mxu0 %v3535_v57  ;;  %1728 = vmatprep.subr.mxu1 %v3536_v63 }
 0x5fb   :  { %1658 = vmatpush1.msra.mxu0 %v3537_v4  ;;  %1729 = vmatpush1.msra.mxu1 %v3538_v32  ;;  %v3553_v4 = vld [vmem:[#allocation61_spill] sm:$0xff] }
 0x5fc   :  { %1659 = vmatprep.subr.mxu0 %v3539_v50  ;;  %1730 = vmatprep.subr.mxu1 %v3540_v6  ;;  %v3554_v6 = vld [vmem:[#allocation62_spill] sm:$0xff] }
 0x5fd   :  { %1660 = vmatpush1.msra.mxu0 %v3541_v56  ;;  %1731 = vmatpush1.msra.mxu1 %v3542_v60  ;;  %v3555_v60 = vld [vmem:[#allocation60_spill] sm:$0xff] }
 0x5fe   :  { %1661 = vmatprep.subr.mxu0 %v3543_v23  ;;  %1732 = vmatprep.subr.mxu1 %v3544_v41 }
 0x5ff   :  { %1662 = vmatpush1.msra.mxu0 %v3545_v59  ;;  %1695 = vmatprep.mubr.f32.mxu0 %v3546_v0 }
 0x600   :  { %1733 = vmatpush1.msra.mxu1 %v3547_v62  ;;  %1766 = vmatprep.mubr.f32.mxu1 %v3546_v0 }
 0x601   :  { %1943 = vmatprep.subr.mxu0 %v3546_v0 }
 0x6a0   :  { %v1528_v18 = vpop.f32.mrf.mxu0  ;;  %v1599_v19 = vpop.f32.mrf.mxu1 }
 0x6a1   :  { %v1604_v21 = vadd.f32 %v1528_v18, %v3548_v20  ;;  %v1606_v35 = vadd.f32 %v1599_v19, %v3551_v34  ;;  %v1925_v34 = vld [vmem:[%s3272_s5] ss:$0 sm:$0xff] }
 0x6a2   :  { %v1530_v22 = vpop.f32.mrf.mxu0  ;;  %v1601_v24 = vpop.f32.mrf.mxu1 }
 0x6a3   :  { %v1608_v25 = vmul.f32 0.5, %v1604_v21  ;;  %v1605_v27 = vadd.f32 %v1530_v22, %v3549_v26  ;;  %v1607_v33 = vadd.f32 %v1601_v24, %v3550_v7  ;;  %v1610_v36 = vmul.f32 0.5, %v1606_v35 }
 0x6a5   :  { %2049 = vtanh.f32 %v1608_v25  ;;  %v1609_v29 = vmul.f32 0.5, %v1605_v27 }
 0x6a7   :  { %2051 = vtanh.f32 %v1609_v29 }
 0x6a8   :  { %2053 = vtanh.f32 %v1607_v33 }
 0x6a9   :  { %2055 = vtanh.f32 %v1610_v36 }
 0x6b2   :  { %v2050_v37 = vpop.eup %2049 }
 0x6b3   :  { %v1614_v38 = vadd.f32 1.0, %v2050_v37 }
 0x6b4   :  { %v2052_v39 = vpop.eup %2051 }
 0x6b5   :  { %v1617_v40 = vmul.f32 0.5, %v1614_v38  ;;  %v1615_v42 = vadd.f32 1.0, %v2052_v39  ;;  %v2054_v43 = vpop.eup %2053 }
 0x6b6   :  { %v2056_v31 = vpop.eup %2055 }
 0x6b7   :  { %v1618_v44 = vmul.f32 0.5, %v1615_v42  ;;  %v1622_v45 = vmul.f32 %v2054_v43, %v1617_v40  ;;  %v1616_v11 = vadd.f32 1.0, %v2056_v31 }
 0x6b9   :  { %v1621_v2 = vmul.f32 %v1618_v44, %v3164_v8  ;;  %v1619_v46 = vmul.f32 0.5, %v1616_v11  ;;  %v1802_v8 = vld [vmem:[#allocation6 + $0x38] sm:$0xff] }
 0x6bb   :  { %v3237_v30 = vadd.f32 %v1622_v45, %v1621_v2 }
 0x6bd   :  { %2057 = vtanh.f32 %v3237_v30 }
 0x6ca   :  { %v2058_v51 = vpop.eup %2057 }
 0x6cb   :  { %v1625_v53 = vmul.f32 %v2058_v51, %v1619_v46 }
 0x6cd   :  { %1696 = vmatmul.mubr.f32.vlgmr.msra.gmra.mxu0 %v1625_v53  ;;  %1767 = vmatmul.mubr.f32.vlgmr.msra.gmra.mxu1 %v1625_v53 }
 0x6ce   :  { %1944 = vmatpush3.msra.mxu0 %v1810_v5  ;;  %1975 = vmatprep.mubr.msk.f32.mxu0 %vm2206_vm2, %v3546_v0 }
 0x6cf   :  { %1945 = vmatprep.subr.mxu0 %v3546_v0 }
 0x6d0   :  { %1946 = vmatpush3.msra.mxu0 %v1809_v28 }
 0x6d1   :  { %1947 = vmatprep.subr.mxu0 %v3546_v0 }
 0x6d2   :  { %1948 = vmatpush3.msra.mxu0 %v1808_v15 }
 0x6d3   :  { %1949 = vmatprep.subr.mxu0 %v3546_v0 }
 0x6d4   :  { %1950 = vmatpush3.msra.mxu0 %v1807_v13 }
 0x6d5   :  { %1951 = vmatprep.subr.mxu0 %v3546_v0 }
 0x6d6   :  { %1952 = vmatpush3.msra.mxu0 %v1806_v12 }
 0x6d7   :  { %1953 = vmatprep.subr.mxu0 %v3546_v0 }
 0x6d8   :  { %1954 = vmatpush3.msra.mxu0 %v1805_v16 }
 0x6d9   :  { %1955 = vmatprep.subr.mxu0 %v3546_v0 }
 0x6da   :  { %1956 = vmatpush3.msra.mxu0 %v1804_v9 }
 0x6db   :  { %1957 = vmatprep.subr.mxu0 %v3546_v0 }
 0x6dc   :  { %1958 = vmatpush3.msra.mxu0 %v1803_v10 }
 0x6dd   :  { %1959 = vmatprep.subr.mxu0 %v3546_v0 }
 0x6de   :  { %1960 = vmatpush3.msra.mxu0 %v1802_v8 }
 0x6df   :  { %1961 = vmatprep.subr.mxu0 %v3546_v0 }
 0x6e0   :  { %1962 = vmatpush3.msra.mxu0 %v1801_v48 }
 0x6e1   :  { %1963 = vmatprep.subr.mxu0 %v3546_v0 }
 0x6e2   :  { %1964 = vmatpush3.msra.mxu0 %v1800_v47 }
 0x6e3   :  { %1965 = vmatprep.subr.mxu0 %v3546_v0 }
 0x6e4   :  { %1966 = vmatpush3.msra.mxu0 %v1799_v49 }
 0x6e5   :  { %1967 = vmatprep.subr.mxu0 %v3546_v0 }
 0x6e6   :  { %1968 = vmatpush3.msra.mxu0 %v1798_v17 }
 0x6e7   :  { %1969 = vmatprep.subr.mxu0 %v3546_v0 }
 0x6e8   :  { %1970 = vmatpush3.msra.mxu0 %v1797_v52 }
 0x6e9   :  { %1971 = vmatprep.subr.mxu0 %v3546_v0 }
 0x6ea   :  { %1972 = vmatpush3.msra.mxu0 %v1796_v58 }
 0x6eb   :  { %1973 = vmatprep.subr.mxu0 %v3546_v0 }
 0x6ec   :  { %1974 = vmatpush3.msra.mxu0 %v1795_v54 }
 0x78d   :  { %v1697_v1 = vpop.f32.mrf.mxu0  ;;  %v1768_v61 = vpop.f32.mrf.mxu1 }
 0x78e   :  { %v1773_v3 = vadd.f32 %v1697_v1, %v3552_v14  ;;  %v1775_v23 = vadd.f32 %v1768_v61, %v3555_v60 }
 0x78f   :  { %v1699_v55 = vpop.f32.mrf.mxu0  ;;  %v1770_v57 = vpop.f32.mrf.mxu1 }
 0x790   :  { %v1777_v63 = vmul.f32 0.5, %v1773_v3  ;;  %v1774_v32 = vadd.f32 %v1699_v55, %v3553_v4  ;;  %v1776_v56 = vadd.f32 %v1770_v57, %v3554_v6  ;;  %v1779_v41 = vmul.f32 0.5, %v1775_v23 }
 0x792   :  { %2059 = vtanh.f32 %v1777_v63  ;;  %v1778_v50 = vmul.f32 0.5, %v1774_v32 }
 0x794   :  { %2061 = vtanh.f32 %v1778_v50 }
 0x795   :  { %2063 = vtanh.f32 %v1776_v56 }
 0x796   :  { %2065 = vtanh.f32 %v1779_v41 }
 0x79f   :  { %v2060_v59 = vpop.eup %2059 }
 0x7a0   :  { %v1783_v0 = vadd.f32 1.0, %v2060_v59 }
 0x7a1   :  { %v2062_v62 = vpop.eup %2061 }
 0x7a2   :  { %v1786_v18 = vmul.f32 0.5, %v1783_v0  ;;  %v1784_v19 = vadd.f32 1.0, %v2062_v62  ;;  %v2064_v20 = vpop.eup %2063 }
 0x7a3   :  { %v2066_v26 = vpop.eup %2065 }
 0x7a4   :  { %v1787_v21 = vmul.f32 0.5, %v1784_v19  ;;  %v1791_v22 = vmul.f32 %v2064_v20, %v1786_v18  ;;  %v1785_v27 = vadd.f32 1.0, %v2066_v26 }
 0x7a6   :  { %v1790_v24 = vmul.f32 %v1787_v21, %v3237_v30  ;;  %v1788_v29 = vmul.f32 0.5, %v1785_v27 }
 0x7a8   :  { %v1792_v25 = vadd.f32 %v1791_v22, %v1790_v24 }
 0x7aa   :  { %2067 = vtanh.f32 %v1792_v25 }
 0x7b7   :  { %v2068_v7 = vpop.eup %2067 }
 0x7b8   :  { %v1794_v33 = vmul.f32 %v2068_v7, %v1788_v29 }
 0x7ba   :  { %1976 = vmatmul.mubr.f32.vlgmr.msra.gmra.mxu0 %v1794_v33 }
 0x87a   :  { %v1884_v35 = vpop.f32.mrf.mxu0 }
 0x87b   :  { %v1885_v36 = vadd.f32 %v1925_v34, %v1884_v35 }
 0x87c   :  { %v1977_v37 = vpop.f32.mrf.mxu0 }
 0x87d   :  { %1888 = vst [vmem:[#allocation8] sm:$0xff] %v1885_v36 }
 0x87e   :  { %2184 = shalt.err (!%p2181_p0)
}
 0x87f   :  { %1898 = dma.vmem_to_hbm [thread:$0]  %s1896_s7, 128, %s3273_s6, [#allocation5]  }
 0x880   :  { %2197 = dma.done.wait [#allocation5], 128  }
 0x881   :  { %2198 = vsyncadd [#allocation5], 4294967168 }
 0x882   :  { %1902 = vsyncpa [#allocation4], 1 }
 0x883   :  { %1903 = vsyncpa [#allocation7], 1 }
 0x884   :  { %1904 = vsyncpa [#allocation5], 1 }

</bundles_post_ra>
